<compile_context>
chip_gen: v6e
topology: v6e:2x2x1
jax: 0.10.0
libtpu: 0.0.40
codegen_flags: <defaults>
</compile_context>

<pallas_src>
import jax
import jax.numpy as jnp
from jax import lax
from jax.experimental import pallas as pl
from jax.experimental.pallas import tpu as pltpu

BN_EPS = 1e-5
KSIZE = 5
PAD = 2


def conv_module_forward(x, weight, bias, gamma, beta):
    """x: (N, Cin, H, W) f32; weight: (Cout, Cin, 5, 5). Returns (N, Cout, H, W).

    `bias` is accepted for parameter parity with nn.Conv2d but is NOT fed to the
    kernel: adding a per-channel constant before training-mode BatchNorm is
    exactly cancelled by the mean subtraction (variance unchanged).
    """
    N, Cin, H, W = x.shape
    Cout = weight.shape[0]
    Wp = W + 2 * PAD               # padded row stride (conv output lives on this grid)
    Hp = H + 2 * PAD + 1           # +1 zero row so every shifted window stays in-bounds
    Lpad = Hp * Wp                 # flat padded length per (image, channel)
    Msl = H * Wp                   # flat conv-output slab length (incl. pad columns)
    HW = H * W                     # de-padded output length (lane-dense)
    K2 = KSIZE * KSIZE
    inv_count = 1.0 / float(N * H * W)

    # ---- wrapper: only cheap parameter reshapes; no padding, no im2col ----
    xf = x.astype(jnp.float32).reshape(N, Cin, HW)
    # w25[cout, (kh*5+kw)*Cin + cin] = weight[cout, cin, kh, kw]
    w25 = jnp.transpose(weight.astype(jnp.float32), (0, 2, 3, 1)).reshape(Cout, K2 * Cin)
    # flat-slab validity mask: column j is a real pixel iff (j % Wp) < W
    mask = (jnp.arange(Msl, dtype=jnp.int32) % Wp < W).astype(jnp.float32).reshape(1, Msl)
    g2 = gamma.astype(jnp.float32).reshape(Cout, 1)
    b2 = beta.astype(jnp.float32).reshape(Cout, 1)
    del bias  # cancels under training-mode BN (see docstring)

    def kernel(x_ref, w_ref, m_ref, g_ref, b_ref, o_ref,
               xp_ref, stk_ref, y_ref, st_ref):
        n = pl.program_id(0)

        @pl.when(n == 0)
        def _init():
            st_ref[...] = jnp.zeros_like(st_ref)
            # zero the pad frame once; the interior is rewritten for every image
            xp_ref[...] = jnp.zeros_like(xp_ref)

        # -- fused padding: copy this image's H real rows into the padded frame --
        for h in range(H):
            xp_ref[:, pl.ds((h + PAD) * Wp + PAD, W)] = x_ref[0, :, pl.ds(h * W, W)]

        # -- build the stacked-K slab: row block t holds the (kh,kw)-shifted window --
        for kh in range(KSIZE):
            for kw in range(KSIZE):
                t = kh * KSIZE + kw
                stk_ref[pl.ds(t * Cin, Cin), :] = xp_ref[:, pl.ds(kh * Wp + kw, Msl)]

        # -- conv: one MXU matmul, contraction depth K = 25*Cin --
        y = jnp.dot(w_ref[...], stk_ref[...],
                    preferred_element_type=jnp.float32)          # (Cout, Msl)
        y_ref[n] = y

        # -- batch statistics (mask applied only inside the reductions) --
        ym = y * m_ref[...]
        st_ref[:, 0:1] += jnp.sum(ym, axis=1, keepdims=True)      # per-channel sum
        st_ref[:, 1:2] += jnp.sum(y * ym, axis=1, keepdims=True)  # per-channel sum of squares

        # -- epilogue on the last image: fold BN into one FMA, ReLU, de-pad, store --
        @pl.when(n == pl.num_programs(0) - 1)
        def _finish():
            mean = st_ref[:, 0:1] * inv_count
            var = st_ref[:, 1:2] * inv_count - mean * mean        # biased (training BN)
            scale = g_ref[...] * lax.rsqrt(var + BN_EPS)          # (Cout, 1)
            shift = b_ref[...] - mean * scale                     # (Cout, 1)
            for i in range(N):
                z = jnp.maximum(y_ref[i] * scale + shift, 0.0)    # (Cout, Msl)
                for h in range(H):
                    o_ref[i, :, h * W:(h + 1) * W] = z[:, h * Wp:h * Wp + W]

    out_flat = pl.pallas_call(
        kernel,
        out_shape=jax.ShapeDtypeStruct((N, Cout, HW), jnp.float32),
        grid=(N,),
        in_specs=[
            pl.BlockSpec((1, Cin, HW), lambda n: (n, 0, 0)),        # this image, unpadded
            pl.BlockSpec((Cout, K2 * Cin), lambda n: (0, 0)),       # tap-folded weights
            pl.BlockSpec((1, Msl), lambda n: (0, 0)),               # pad-column mask
            pl.BlockSpec((Cout, 1), lambda n: (0, 0)),              # gamma
            pl.BlockSpec((Cout, 1), lambda n: (0, 0)),              # beta
        ],
        # output block covers the whole array with a constant index_map: it stays
        # resident in VMEM across the batch axis and is written once at the end.
        out_specs=pl.BlockSpec((N, Cout, HW), lambda n: (0, 0, 0)),
        scratch_shapes=[
            pltpu.VMEM((Cin, Lpad), jnp.float32),        # padded input frame
            pltpu.VMEM((K2 * Cin, Msl), jnp.float32),    # stacked-K slab
            pltpu.VMEM((N, Cout, Msl), jnp.float32),     # conv output for all images
            pltpu.VMEM((Cout, 2), jnp.float32),          # per-channel [sum, sumsq]
        ],
        compiler_params=pltpu.CompilerParams(
            # batch axis carries the BN-stat accumulation and the resident output
            dimension_semantics=("arbitrary",),
            vmem_limit_bytes=32 * 1024 * 1024,
        ),
    )(xf, w25, mask, g2, b2)

    # Free metadata reshape (contiguous split of the last dim) back to NCHW.
    return out_flat.reshape(N, Cout, H, W)


def _reference(x, weight, bias, gamma, beta):
    y = lax.conv_general_dilated(
        x, weight, window_strides=(1, 1), padding=[(PAD, PAD), (PAD, PAD)],
        dimension_numbers=("NCHW", "OIHW", "NCHW"),
    ) + bias[None, :, None, None]
    mean = y.mean(axis=(0, 2, 3), keepdims=True)
    var = jnp.square(y - mean).mean(axis=(0, 2, 3), keepdims=True)
    y_hat = (y - mean) / jnp.sqrt(var + BN_EPS)
    out = y_hat * gamma[None, :, None, None] + beta[None, :, None, None]
    return jnp.maximum(out, 0.0)


if __name__ == "__main__":
    N, Cin, Cout, H, W = 2, 4, 8, 16, 16

    key = jax.random.PRNGKey(0)
    kx, kw, kb = jax.random.split(key, 3)

    x = jax.random.normal(kx, (N, Cin, H, W), dtype=jnp.float32)

    # Deterministic parameter init (mimics PyTorch Conv2d default uniform bound).
    fan_in = Cin * KSIZE * KSIZE
    bound = 1.0 / (fan_in ** 0.5)
    weight = jax.random.uniform(kw, (Cout, Cin, KSIZE, KSIZE),
                                minval=-bound, maxval=bound, dtype=jnp.float32)
    bias = jax.random.uniform(kb, (Cout,), minval=-bound, maxval=bound,
                              dtype=jnp.float32)
    gamma = jnp.ones((Cout,), dtype=jnp.float32)   # BatchNorm2d weight init
    beta = jnp.zeros((Cout,), dtype=jnp.float32)   # BatchNorm2d bias init

    out = conv_module_forward(x, weight, bias, gamma, beta)
    out = jax.block_until_ready(out)

    ref = _reference(x, weight, bias, gamma, beta)
    assert out.shape == (N, Cout, H, W)
    assert jnp.allclose(out, ref, atol=1e-4, rtol=1e-4), "mismatch vs reference"

    print("KERNEL_OK")
</pallas_src>

<mosaic_0001>
module attributes {stable_mosaic.version = 11 : i64} {
  func.func @kernel(%arg0: i32, %arg1: memref<1x4x256xf32, #tpu.memory_space<vmem>>, %arg2: memref<8x100xf32, #tpu.memory_space<vmem>>, %arg3: memref<1x320xf32, #tpu.memory_space<vmem>>, %arg4: memref<8x1xf32, #tpu.memory_space<vmem>>, %arg5: memref<8x1xf32, #tpu.memory_space<vmem>>, %arg6: memref<2x8x256xf32, #tpu.memory_space<vmem>>, %arg7: memref<4x420xf32, #tpu.memory_space<vmem>>, %arg8: memref<100x320xf32, #tpu.memory_space<vmem>>, %arg9: memref<2x8x320xf32, #tpu.memory_space<vmem>>, %arg10: memref<8x2xf32, #tpu.memory_space<vmem>>) attributes {dimension_semantics = [#tpu.dimension_semantics<arbitrary>], iteration_bounds = array<i64: 2>, scalar_prefetch = 0 : i64, scratch_operands = 4 : i64, tpu.core_type = #tpu.core_type<tc>, window_params = [{transform_indices = @transform_0, window_bounds = array<i64: 1, 4, 256>}, {pipeline_mode = #tpu.pipeline_mode<synchronous>, transform_indices = @transform_1, window_bounds = array<i64: 8, 100>}, {pipeline_mode = #tpu.pipeline_mode<synchronous>, transform_indices = @transform_2, window_bounds = array<i64: 1, 320>}, {pipeline_mode = #tpu.pipeline_mode<synchronous>, transform_indices = @transform_3, window_bounds = array<i64: 8, 1>}, {pipeline_mode = #tpu.pipeline_mode<synchronous>, transform_indices = @transform_4, window_bounds = array<i64: 8, 1>}, {pipeline_mode = #tpu.pipeline_mode<synchronous>, transform_indices = @transform_5, window_bounds = array<i64: 2, 8, 256>}]} {
    %c0_i32 = arith.constant 0 : i32
    %0 = arith.cmpi eq, %arg0, %c0_i32 : i32
    %1 = arith.extui %0 : i1 to i32
    %c0_i32_0 = arith.constant 0 : i32
    %2 = arith.cmpi ne, %1, %c0_i32_0 : i32
    scf.if %2 {
      %cst_138 = arith.constant 0.000000e+00 : f32
      %125 = vector.broadcast %cst_138 : f32 to vector<8x2xf32>
      %c0_139 = arith.constant 0 : index
      %c0_140 = arith.constant 0 : index
      %126 = vector.load %arg10[%c0_139, %c0_140] : memref<8x2xf32, #tpu.memory_space<vmem>>, vector<8x2xf32>
      tpu.vector_store %arg10[%c0_139, %c0_140], %125 {strides = array<i32>} : memref<8x2xf32, #tpu.memory_space<vmem>>, vector<8x2xf32>,
      %cst_141 = arith.constant 0.000000e+00 : f32
      %127 = vector.broadcast %cst_141 : f32 to vector<4x420xf32>
      %c0_142 = arith.constant 0 : index
      %c0_143 = arith.constant 0 : index
      %128 = vector.load %arg7[%c0_142, %c0_143] : memref<4x420xf32, #tpu.memory_space<vmem>>, vector<4x420xf32>
      tpu.vector_store %arg7[%c0_142, %c0_143], %127 {strides = array<i32>} : memref<4x420xf32, #tpu.memory_space<vmem>>, vector<4x420xf32>,
    } else {
    }
    %c0 = arith.constant 0 : index
    %c0_1 = arith.constant 0 : index
    %c0_2 = arith.constant 0 : index
    %3 = vector.load %arg1[%c0, %c0_1, %c0_2] : memref<1x4x256xf32, #tpu.memory_space<vmem>>, vector<1x4x16xf32>
    %4 = vector.shape_cast %3 : vector<1x4x16xf32> to vector<4x16xf32>
    %c0_3 = arith.constant 0 : index
    %c42 = arith.constant 42 : index
    %5 = vector.load %arg7[%c0_3, %c42] : memref<4x420xf32, #tpu.memory_space<vmem>>, vector<4x16xf32>
    tpu.vector_store %arg7[%c0_3, %c42], %4 {strides = array<i32>} : memref<4x420xf32, #tpu.memory_space<vmem>>, vector<4x16xf32>,
    %c0_4 = arith.constant 0 : index
    %c0_5 = arith.constant 0 : index
    %c16 = arith.constant 16 : index
    %6 = vector.load %arg1[%c0_4, %c0_5, %c16] : memref<1x4x256xf32, #tpu.memory_space<vmem>>, vector<1x4x16xf32>
    %7 = vector.shape_cast %6 : vector<1x4x16xf32> to vector<4x16xf32>
    %c0_6 = arith.constant 0 : index
    %c62 = arith.constant 62 : index
    %8 = vector.load %arg7[%c0_6, %c62] : memref<4x420xf32, #tpu.memory_space<vmem>>, vector<4x16xf32>
    tpu.vector_store %arg7[%c0_6, %c62], %7 {strides = array<i32>} : memref<4x420xf32, #tpu.memory_space<vmem>>, vector<4x16xf32>,
    %c0_7 = arith.constant 0 : index
    %c0_8 = arith.constant 0 : index
    %c32 = arith.constant 32 : index
    %9 = vector.load %arg1[%c0_7, %c0_8, %c32] : memref<1x4x256xf32, #tpu.memory_space<vmem>>, vector<1x4x16xf32>
    %10 = vector.shape_cast %9 : vector<1x4x16xf32> to vector<4x16xf32>
    %c0_9 = arith.constant 0 : index
    %c82 = arith.constant 82 : index
    %11 = vector.load %arg7[%c0_9, %c82] : memref<4x420xf32, #tpu.memory_space<vmem>>, vector<4x16xf32>
    tpu.vector_store %arg7[%c0_9, %c82], %10 {strides = array<i32>} : memref<4x420xf32, #tpu.memory_space<vmem>>, vector<4x16xf32>,
    %c0_10 = arith.constant 0 : index
    %c0_11 = arith.constant 0 : index
    %c48 = arith.constant 48 : index
    %12 = vector.load %arg1[%c0_10, %c0_11, %c48] : memref<1x4x256xf32, #tpu.memory_space<vmem>>, vector<1x4x16xf32>
    %13 = vector.shape_cast %12 : vector<1x4x16xf32> to vector<4x16xf32>
    %c0_12 = arith.constant 0 : index
    %c102 = arith.constant 102 : index
    %14 = vector.load %arg7[%c0_12, %c102] : memref<4x420xf32, #tpu.memory_space<vmem>>, vector<4x16xf32>
    tpu.vector_store %arg7[%c0_12, %c102], %13 {strides = array<i32>} : memref<4x420xf32, #tpu.memory_space<vmem>>, vector<4x16xf32>,
    %c0_13 = arith.constant 0 : index
    %c0_14 = arith.constant 0 : index
    %c64 = arith.constant 64 : index
    %15 = vector.load %arg1[%c0_13, %c0_14, %c64] : memref<1x4x256xf32, #tpu.memory_space<vmem>>, vector<1x4x16xf32>
    %16 = vector.shape_cast %15 : vector<1x4x16xf32> to vector<4x16xf32>
    %c0_15 = arith.constant 0 : index
    %c122 = arith.constant 122 : index
    %17 = vector.load %arg7[%c0_15, %c122] : memref<4x420xf32, #tpu.memory_space<vmem>>, vector<4x16xf32>
    tpu.vector_store %arg7[%c0_15, %c122], %16 {strides = array<i32>} : memref<4x420xf32, #tpu.memory_space<vmem>>, vector<4x16xf32>,
    %c0_16 = arith.constant 0 : index
    %c0_17 = arith.constant 0 : index
    %c80 = arith.constant 80 : index
    %18 = vector.load %arg1[%c0_16, %c0_17, %c80] : memref<1x4x256xf32, #tpu.memory_space<vmem>>, vector<1x4x16xf32>
    %19 = vector.shape_cast %18 : vector<1x4x16xf32> to vector<4x16xf32>
    %c0_18 = arith.constant 0 : index
    %c142 = arith.constant 142 : index
    %20 = vector.load %arg7[%c0_18, %c142] : memref<4x420xf32, #tpu.memory_space<vmem>>, vector<4x16xf32>
    tpu.vector_store %arg7[%c0_18, %c142], %19 {strides = array<i32>} : memref<4x420xf32, #tpu.memory_space<vmem>>, vector<4x16xf32>,
    %c0_19 = arith.constant 0 : index
    %c0_20 = arith.constant 0 : index
    %c96 = arith.constant 96 : index
    %21 = vector.load %arg1[%c0_19, %c0_20, %c96] : memref<1x4x256xf32, #tpu.memory_space<vmem>>, vector<1x4x16xf32>
    %22 = vector.shape_cast %21 : vector<1x4x16xf32> to vector<4x16xf32>
    %c0_21 = arith.constant 0 : index
    %c162 = arith.constant 162 : index
    %23 = vector.load %arg7[%c0_21, %c162] : memref<4x420xf32, #tpu.memory_space<vmem>>, vector<4x16xf32>
    tpu.vector_store %arg7[%c0_21, %c162], %22 {strides = array<i32>} : memref<4x420xf32, #tpu.memory_space<vmem>>, vector<4x16xf32>,
    %c0_22 = arith.constant 0 : index
    %c0_23 = arith.constant 0 : index
    %c112 = arith.constant 112 : index
    %24 = vector.load %arg1[%c0_22, %c0_23, %c112] : memref<1x4x256xf32, #tpu.memory_space<vmem>>, vector<1x4x16xf32>
    %25 = vector.shape_cast %24 : vector<1x4x16xf32> to vector<4x16xf32>
    %c0_24 = arith.constant 0 : index
    %c182 = arith.constant 182 : index
    %26 = vector.load %arg7[%c0_24, %c182] : memref<4x420xf32, #tpu.memory_space<vmem>>, vector<4x16xf32>
    tpu.vector_store %arg7[%c0_24, %c182], %25 {strides = array<i32>} : memref<4x420xf32, #tpu.memory_space<vmem>>, vector<4x16xf32>,
    %c0_25 = arith.constant 0 : index
    %c0_26 = arith.constant 0 : index
    %c128 = arith.constant 128 : index
    %27 = vector.load %arg1[%c0_25, %c0_26, %c128] : memref<1x4x256xf32, #tpu.memory_space<vmem>>, vector<1x4x16xf32>
    %28 = vector.shape_cast %27 : vector<1x4x16xf32> to vector<4x16xf32>
    %c0_27 = arith.constant 0 : index
    %c202 = arith.constant 202 : index
    %29 = vector.load %arg7[%c0_27, %c202] : memref<4x420xf32, #tpu.memory_space<vmem>>, vector<4x16xf32>
    tpu.vector_store %arg7[%c0_27, %c202], %28 {strides = array<i32>} : memref<4x420xf32, #tpu.memory_space<vmem>>, vector<4x16xf32>,
    %c0_28 = arith.constant 0 : index
    %c0_29 = arith.constant 0 : index
    %c144 = arith.constant 144 : index
    %30 = vector.load %arg1[%c0_28, %c0_29, %c144] : memref<1x4x256xf32, #tpu.memory_space<vmem>>, vector<1x4x16xf32>
    %31 = vector.shape_cast %30 : vector<1x4x16xf32> to vector<4x16xf32>
    %c0_30 = arith.constant 0 : index
    %c222 = arith.constant 222 : index
    %32 = vector.load %arg7[%c0_30, %c222] : memref<4x420xf32, #tpu.memory_space<vmem>>, vector<4x16xf32>
    tpu.vector_store %arg7[%c0_30, %c222], %31 {strides = array<i32>} : memref<4x420xf32, #tpu.memory_space<vmem>>, vector<4x16xf32>,
    %c0_31 = arith.constant 0 : index
    %c0_32 = arith.constant 0 : index
    %c160 = arith.constant 160 : index
    %33 = vector.load %arg1[%c0_31, %c0_32, %c160] : memref<1x4x256xf32, #tpu.memory_space<vmem>>, vector<1x4x16xf32>
    %34 = vector.shape_cast %33 : vector<1x4x16xf32> to vector<4x16xf32>
    %c0_33 = arith.constant 0 : index
    %c242 = arith.constant 242 : index
    %35 = vector.load %arg7[%c0_33, %c242] : memref<4x420xf32, #tpu.memory_space<vmem>>, vector<4x16xf32>
    tpu.vector_store %arg7[%c0_33, %c242], %34 {strides = array<i32>} : memref<4x420xf32, #tpu.memory_space<vmem>>, vector<4x16xf32>,
    %c0_34 = arith.constant 0 : index
    %c0_35 = arith.constant 0 : index
    %c176 = arith.constant 176 : index
    %36 = vector.load %arg1[%c0_34, %c0_35, %c176] : memref<1x4x256xf32, #tpu.memory_space<vmem>>, vector<1x4x16xf32>
    %37 = vector.shape_cast %36 : vector<1x4x16xf32> to vector<4x16xf32>
    %c0_36 = arith.constant 0 : index
    %c262 = arith.constant 262 : index
    %38 = vector.load %arg7[%c0_36, %c262] : memref<4x420xf32, #tpu.memory_space<vmem>>, vector<4x16xf32>
    tpu.vector_store %arg7[%c0_36, %c262], %37 {strides = array<i32>} : memref<4x420xf32, #tpu.memory_space<vmem>>, vector<4x16xf32>,
    %c0_37 = arith.constant 0 : index
    %c0_38 = arith.constant 0 : index
    %c192 = arith.constant 192 : index
    %39 = vector.load %arg1[%c0_37, %c0_38, %c192] : memref<1x4x256xf32, #tpu.memory_space<vmem>>, vector<1x4x16xf32>
    %40 = vector.shape_cast %39 : vector<1x4x16xf32> to vector<4x16xf32>
    %c0_39 = arith.constant 0 : index
    %c282 = arith.constant 282 : index
    %41 = vector.load %arg7[%c0_39, %c282] : memref<4x420xf32, #tpu.memory_space<vmem>>, vector<4x16xf32>
    tpu.vector_store %arg7[%c0_39, %c282], %40 {strides = array<i32>} : memref<4x420xf32, #tpu.memory_space<vmem>>, vector<4x16xf32>,
    %c0_40 = arith.constant 0 : index
    %c0_41 = arith.constant 0 : index
    %c208 = arith.constant 208 : index
    %42 = vector.load %arg1[%c0_40, %c0_41, %c208] : memref<1x4x256xf32, #tpu.memory_space<vmem>>, vector<1x4x16xf32>
    %43 = vector.shape_cast %42 : vector<1x4x16xf32> to vector<4x16xf32>
    %c0_42 = arith.constant 0 : index
    %c302 = arith.constant 302 : index
    %44 = vector.load %arg7[%c0_42, %c302] : memref<4x420xf32, #tpu.memory_space<vmem>>, vector<4x16xf32>
    tpu.vector_store %arg7[%c0_42, %c302], %43 {strides = array<i32>} : memref<4x420xf32, #tpu.memory_space<vmem>>, vector<4x16xf32>,
    %c0_43 = arith.constant 0 : index
    %c0_44 = arith.constant 0 : index
    %c224 = arith.constant 224 : index
    %45 = vector.load %arg1[%c0_43, %c0_44, %c224] : memref<1x4x256xf32, #tpu.memory_space<vmem>>, vector<1x4x16xf32>
    %46 = vector.shape_cast %45 : vector<1x4x16xf32> to vector<4x16xf32>
    %c0_45 = arith.constant 0 : index
    %c322 = arith.constant 322 : index
    %47 = vector.load %arg7[%c0_45, %c322] : memref<4x420xf32, #tpu.memory_space<vmem>>, vector<4x16xf32>
    tpu.vector_store %arg7[%c0_45, %c322], %46 {strides = array<i32>} : memref<4x420xf32, #tpu.memory_space<vmem>>, vector<4x16xf32>,
    %c0_46 = arith.constant 0 : index
    %c0_47 = arith.constant 0 : index
    %c240 = arith.constant 240 : index
    %48 = vector.load %arg1[%c0_46, %c0_47, %c240] : memref<1x4x256xf32, #tpu.memory_space<vmem>>, vector<1x4x16xf32>
    %49 = vector.shape_cast %48 : vector<1x4x16xf32> to vector<4x16xf32>
    %c0_48 = arith.constant 0 : index
    %c342 = arith.constant 342 : index
    %50 = vector.load %arg7[%c0_48, %c342] : memref<4x420xf32, #tpu.memory_space<vmem>>, vector<4x16xf32>
    tpu.vector_store %arg7[%c0_48, %c342], %49 {strides = array<i32>} : memref<4x420xf32, #tpu.memory_space<vmem>>, vector<4x16xf32>,
    %c0_49 = arith.constant 0 : index
    %c0_50 = arith.constant 0 : index
    %51 = vector.load %arg7[%c0_49, %c0_50] : memref<4x420xf32, #tpu.memory_space<vmem>>, vector<4x320xf32>
    %c0_51 = arith.constant 0 : index
    %c0_52 = arith.constant 0 : index
    %52 = vector.load %arg8[%c0_51, %c0_52] : memref<100x320xf32, #tpu.memory_space<vmem>>, vector<4x320xf32>
    tpu.vector_store %arg8[%c0_51, %c0_52], %51 {strides = array<i32>} : memref<100x320xf32, #tpu.memory_space<vmem>>, vector<4x320xf32>,
    %c0_53 = arith.constant 0 : index
    %c1 = arith.constant 1 : index
    %53 = vector.load %arg7[%c0_53, %c1] : memref<4x420xf32, #tpu.memory_space<vmem>>, vector<4x320xf32>
    %c4 = arith.constant 4 : index
    %c0_54 = arith.constant 0 : index
    %54 = vector.load %arg8[%c4, %c0_54] : memref<100x320xf32, #tpu.memory_space<vmem>>, vector<4x320xf32>
    tpu.vector_store %arg8[%c4, %c0_54], %53 {strides = array<i32>} : memref<100x320xf32, #tpu.memory_space<vmem>>, vector<4x320xf32>,
    %c0_55 = arith.constant 0 : index
    %c2 = arith.constant 2 : index
    %55 = vector.load %arg7[%c0_55, %c2] : memref<4x420xf32, #tpu.memory_space<vmem>>, vector<4x320xf32>
    %c8 = arith.constant 8 : index
    %c0_56 = arith.constant 0 : index
    %56 = vector.load %arg8[%c8, %c0_56] : memref<100x320xf32, #tpu.memory_space<vmem>>, vector<4x320xf32>
    tpu.vector_store %arg8[%c8, %c0_56], %55 {strides = array<i32>} : memref<100x320xf32, #tpu.memory_space<vmem>>, vector<4x320xf32>,
    %c0_57 = arith.constant 0 : index
    %c3 = arith.constant 3 : index
    %57 = vector.load %arg7[%c0_57, %c3] : memref<4x420xf32, #tpu.memory_space<vmem>>, vector<4x320xf32>
    %c12 = arith.constant 12 : index
    %c0_58 = arith.constant 0 : index
    %58 = vector.load %arg8[%c12, %c0_58] : memref<100x320xf32, #tpu.memory_space<vmem>>, vector<4x320xf32>
    tpu.vector_store %arg8[%c12, %c0_58], %57 {strides = array<i32>} : memref<100x320xf32, #tpu.memory_space<vmem>>, vector<4x320xf32>,
    %c0_59 = arith.constant 0 : index
    %c4_60 = arith.constant 4 : index
    %59 = vector.load %arg7[%c0_59, %c4_60] : memref<4x420xf32, #tpu.memory_space<vmem>>, vector<4x320xf32>
    %c16_61 = arith.constant 16 : index
    %c0_62 = arith.constant 0 : index
    %60 = vector.load %arg8[%c16_61, %c0_62] : memref<100x320xf32, #tpu.memory_space<vmem>>, vector<4x320xf32>
    tpu.vector_store %arg8[%c16_61, %c0_62], %59 {strides = array<i32>} : memref<100x320xf32, #tpu.memory_space<vmem>>, vector<4x320xf32>,
    %c0_63 = arith.constant 0 : index
    %c20 = arith.constant 20 : index
    %61 = vector.load %arg7[%c0_63, %c20] : memref<4x420xf32, #tpu.memory_space<vmem>>, vector<4x320xf32>
    %c20_64 = arith.constant 20 : index
    %c0_65 = arith.constant 0 : index
    %62 = vector.load %arg8[%c20_64, %c0_65] : memref<100x320xf32, #tpu.memory_space<vmem>>, vector<4x320xf32>
    tpu.vector_store %arg8[%c20_64, %c0_65], %61 {strides = array<i32>} : memref<100x320xf32, #tpu.memory_space<vmem>>, vector<4x320xf32>,
    %c0_66 = arith.constant 0 : index
    %c21 = arith.constant 21 : index
    %63 = vector.load %arg7[%c0_66, %c21] : memref<4x420xf32, #tpu.memory_space<vmem>>, vector<4x320xf32>
    %c24 = arith.constant 24 : index
    %c0_67 = arith.constant 0 : index
    %64 = vector.load %arg8[%c24, %c0_67] : memref<100x320xf32, #tpu.memory_space<vmem>>, vector<4x320xf32>
    tpu.vector_store %arg8[%c24, %c0_67], %63 {strides = array<i32>} : memref<100x320xf32, #tpu.memory_space<vmem>>, vector<4x320xf32>,
    %c0_68 = arith.constant 0 : index
    %c22 = arith.constant 22 : index
    %65 = vector.load %arg7[%c0_68, %c22] : memref<4x420xf32, #tpu.memory_space<vmem>>, vector<4x320xf32>
    %c28 = arith.constant 28 : index
    %c0_69 = arith.constant 0 : index
    %66 = vector.load %arg8[%c28, %c0_69] : memref<100x320xf32, #tpu.memory_space<vmem>>, vector<4x320xf32>
    tpu.vector_store %arg8[%c28, %c0_69], %65 {strides = array<i32>} : memref<100x320xf32, #tpu.memory_space<vmem>>, vector<4x320xf32>,
    %c0_70 = arith.constant 0 : index
    %c23 = arith.constant 23 : index
    %67 = vector.load %arg7[%c0_70, %c23] : memref<4x420xf32, #tpu.memory_space<vmem>>, vector<4x320xf32>
    %c32_71 = arith.constant 32 : index
    %c0_72 = arith.constant 0 : index
    %68 = vector.load %arg8[%c32_71, %c0_72] : memref<100x320xf32, #tpu.memory_space<vmem>>, vector<4x320xf32>
    tpu.vector_store %arg8[%c32_71, %c0_72], %67 {strides = array<i32>} : memref<100x320xf32, #tpu.memory_space<vmem>>, vector<4x320xf32>,
    %c0_73 = arith.constant 0 : index
    %c24_74 = arith.constant 24 : index
    %69 = vector.load %arg7[%c0_73, %c24_74] : memref<4x420xf32, #tpu.memory_space<vmem>>, vector<4x320xf32>
    %c36 = arith.constant 36 : index
    %c0_75 = arith.constant 0 : index
    %70 = vector.load %arg8[%c36, %c0_75] : memref<100x320xf32, #tpu.memory_space<vmem>>, vector<4x320xf32>
    tpu.vector_store %arg8[%c36, %c0_75], %69 {strides = array<i32>} : memref<100x320xf32, #tpu.memory_space<vmem>>, vector<4x320xf32>,
    %c0_76 = arith.constant 0 : index
    %c40 = arith.constant 40 : index
    %71 = vector.load %arg7[%c0_76, %c40] : memref<4x420xf32, #tpu.memory_space<vmem>>, vector<4x320xf32>
    %c40_77 = arith.constant 40 : index
    %c0_78 = arith.constant 0 : index
    %72 = vector.load %arg8[%c40_77, %c0_78] : memref<100x320xf32, #tpu.memory_space<vmem>>, vector<4x320xf32>
    tpu.vector_store %arg8[%c40_77, %c0_78], %71 {strides = array<i32>} : memref<100x320xf32, #tpu.memory_space<vmem>>, vector<4x320xf32>,
    %c0_79 = arith.constant 0 : index
    %c41 = arith.constant 41 : index
    %73 = vector.load %arg7[%c0_79, %c41] : memref<4x420xf32, #tpu.memory_space<vmem>>, vector<4x320xf32>
    %c44 = arith.constant 44 : index
    %c0_80 = arith.constant 0 : index
    %74 = vector.load %arg8[%c44, %c0_80] : memref<100x320xf32, #tpu.memory_space<vmem>>, vector<4x320xf32>
    tpu.vector_store %arg8[%c44, %c0_80], %73 {strides = array<i32>} : memref<100x320xf32, #tpu.memory_space<vmem>>, vector<4x320xf32>,
    %c0_81 = arith.constant 0 : index
    %c42_82 = arith.constant 42 : index
    %75 = vector.load %arg7[%c0_81, %c42_82] : memref<4x420xf32, #tpu.memory_space<vmem>>, vector<4x320xf32>
    %c48_83 = arith.constant 48 : index
    %c0_84 = arith.constant 0 : index
    %76 = vector.load %arg8[%c48_83, %c0_84] : memref<100x320xf32, #tpu.memory_space<vmem>>, vector<4x320xf32>
    tpu.vector_store %arg8[%c48_83, %c0_84], %75 {strides = array<i32>} : memref<100x320xf32, #tpu.memory_space<vmem>>, vector<4x320xf32>,
    %c0_85 = arith.constant 0 : index
    %c43 = arith.constant 43 : index
    %77 = vector.load %arg7[%c0_85, %c43] : memref<4x420xf32, #tpu.memory_space<vmem>>, vector<4x320xf32>
    %c52 = arith.constant 52 : index
    %c0_86 = arith.constant 0 : index
    %78 = vector.load %arg8[%c52, %c0_86] : memref<100x320xf32, #tpu.memory_space<vmem>>, vector<4x320xf32>
    tpu.vector_store %arg8[%c52, %c0_86], %77 {strides = array<i32>} : memref<100x320xf32, #tpu.memory_space<vmem>>, vector<4x320xf32>,
    %c0_87 = arith.constant 0 : index
    %c44_88 = arith.constant 44 : index
    %79 = vector.load %arg7[%c0_87, %c44_88] : memref<4x420xf32, #tpu.memory_space<vmem>>, vector<4x320xf32>
    %c56 = arith.constant 56 : index
    %c0_89 = arith.constant 0 : index
    %80 = vector.load %arg8[%c56, %c0_89] : memref<100x320xf32, #tpu.memory_space<vmem>>, vector<4x320xf32>
    tpu.vector_store %arg8[%c56, %c0_89], %79 {strides = array<i32>} : memref<100x320xf32, #tpu.memory_space<vmem>>, vector<4x320xf32>,
    %c0_90 = arith.constant 0 : index
    %c60 = arith.constant 60 : index
    %81 = vector.load %arg7[%c0_90, %c60] : memref<4x420xf32, #tpu.memory_space<vmem>>, vector<4x320xf32>
    %c60_91 = arith.constant 60 : index
    %c0_92 = arith.constant 0 : index
    %82 = vector.load %arg8[%c60_91, %c0_92] : memref<100x320xf32, #tpu.memory_space<vmem>>, vector<4x320xf32>
    tpu.vector_store %arg8[%c60_91, %c0_92], %81 {strides = array<i32>} : memref<100x320xf32, #tpu.memory_space<vmem>>, vector<4x320xf32>,
    %c0_93 = arith.constant 0 : index
    %c61 = arith.constant 61 : index
    %83 = vector.load %arg7[%c0_93, %c61] : memref<4x420xf32, #tpu.memory_space<vmem>>, vector<4x320xf32>
    %c64_94 = arith.constant 64 : index
    %c0_95 = arith.constant 0 : index
    %84 = vector.load %arg8[%c64_94, %c0_95] : memref<100x320xf32, #tpu.memory_space<vmem>>, vector<4x320xf32>
    tpu.vector_store %arg8[%c64_94, %c0_95], %83 {strides = array<i32>} : memref<100x320xf32, #tpu.memory_space<vmem>>, vector<4x320xf32>,
    %c0_96 = arith.constant 0 : index
    %c62_97 = arith.constant 62 : index
    %85 = vector.load %arg7[%c0_96, %c62_97] : memref<4x420xf32, #tpu.memory_space<vmem>>, vector<4x320xf32>
    %c68 = arith.constant 68 : index
    %c0_98 = arith.constant 0 : index
    %86 = vector.load %arg8[%c68, %c0_98] : memref<100x320xf32, #tpu.memory_space<vmem>>, vector<4x320xf32>
    tpu.vector_store %arg8[%c68, %c0_98], %85 {strides = array<i32>} : memref<100x320xf32, #tpu.memory_space<vmem>>, vector<4x320xf32>,
    %c0_99 = arith.constant 0 : index
    %c63 = arith.constant 63 : index
    %87 = vector.load %arg7[%c0_99, %c63] : memref<4x420xf32, #tpu.memory_space<vmem>>, vector<4x320xf32>
    %c72 = arith.constant 72 : index
    %c0_100 = arith.constant 0 : index
    %88 = vector.load %arg8[%c72, %c0_100] : memref<100x320xf32, #tpu.memory_space<vmem>>, vector<4x320xf32>
    tpu.vector_store %arg8[%c72, %c0_100], %87 {strides = array<i32>} : memref<100x320xf32, #tpu.memory_space<vmem>>, vector<4x320xf32>,
    %c0_101 = arith.constant 0 : index
    %c64_102 = arith.constant 64 : index
    %89 = vector.load %arg7[%c0_101, %c64_102] : memref<4x420xf32, #tpu.memory_space<vmem>>, vector<4x320xf32>
    %c76 = arith.constant 76 : index
    %c0_103 = arith.constant 0 : index
    %90 = vector.load %arg8[%c76, %c0_103] : memref<100x320xf32, #tpu.memory_space<vmem>>, vector<4x320xf32>
    tpu.vector_store %arg8[%c76, %c0_103], %89 {strides = array<i32>} : memref<100x320xf32, #tpu.memory_space<vmem>>, vector<4x320xf32>,
    %c0_104 = arith.constant 0 : index
    %c80_105 = arith.constant 80 : index
    %91 = vector.load %arg7[%c0_104, %c80_105] : memref<4x420xf32, #tpu.memory_space<vmem>>, vector<4x320xf32>
    %c80_106 = arith.constant 80 : index
    %c0_107 = arith.constant 0 : index
    %92 = vector.load %arg8[%c80_106, %c0_107] : memref<100x320xf32, #tpu.memory_space<vmem>>, vector<4x320xf32>
    tpu.vector_store %arg8[%c80_106, %c0_107], %91 {strides = array<i32>} : memref<100x320xf32, #tpu.memory_space<vmem>>, vector<4x320xf32>,
    %c0_108 = arith.constant 0 : index
    %c81 = arith.constant 81 : index
    %93 = vector.load %arg7[%c0_108, %c81] : memref<4x420xf32, #tpu.memory_space<vmem>>, vector<4x320xf32>
    %c84 = arith.constant 84 : index
    %c0_109 = arith.constant 0 : index
    %94 = vector.load %arg8[%c84, %c0_109] : memref<100x320xf32, #tpu.memory_space<vmem>>, vector<4x320xf32>
    tpu.vector_store %arg8[%c84, %c0_109], %93 {strides = array<i32>} : memref<100x320xf32, #tpu.memory_space<vmem>>, vector<4x320xf32>,
    %c0_110 = arith.constant 0 : index
    %c82_111 = arith.constant 82 : index
    %95 = vector.load %arg7[%c0_110, %c82_111] : memref<4x420xf32, #tpu.memory_space<vmem>>, vector<4x320xf32>
    %c88 = arith.constant 88 : index
    %c0_112 = arith.constant 0 : index
    %96 = vector.load %arg8[%c88, %c0_112] : memref<100x320xf32, #tpu.memory_space<vmem>>, vector<4x320xf32>
    tpu.vector_store %arg8[%c88, %c0_112], %95 {strides = array<i32>} : memref<100x320xf32, #tpu.memory_space<vmem>>, vector<4x320xf32>,
    %c0_113 = arith.constant 0 : index
    %c83 = arith.constant 83 : index
    %97 = vector.load %arg7[%c0_113, %c83] : memref<4x420xf32, #tpu.memory_space<vmem>>, vector<4x320xf32>
    %c92 = arith.constant 92 : index
    %c0_114 = arith.constant 0 : index
    %98 = vector.load %arg8[%c92, %c0_114] : memref<100x320xf32, #tpu.memory_space<vmem>>, vector<4x320xf32>
    tpu.vector_store %arg8[%c92, %c0_114], %97 {strides = array<i32>} : memref<100x320xf32, #tpu.memory_space<vmem>>, vector<4x320xf32>,
    %c0_115 = arith.constant 0 : index
    %c84_116 = arith.constant 84 : index
    %99 = vector.load %arg7[%c0_115, %c84_116] : memref<4x420xf32, #tpu.memory_space<vmem>>, vector<4x320xf32>
    %c96_117 = arith.constant 96 : index
    %c0_118 = arith.constant 0 : index
    %100 = vector.load %arg8[%c96_117, %c0_118] : memref<100x320xf32, #tpu.memory_space<vmem>>, vector<4x320xf32>
    tpu.vector_store %arg8[%c96_117, %c0_118], %99 {strides = array<i32>} : memref<100x320xf32, #tpu.memory_space<vmem>>, vector<4x320xf32>,
    %c0_119 = arith.constant 0 : index
    %c0_120 = arith.constant 0 : index
    %101 = vector.load %arg2[%c0_119, %c0_120] : memref<8x100xf32, #tpu.memory_space<vmem>>, vector<8x100xf32>
    %c0_121 = arith.constant 0 : index
    %c0_122 = arith.constant 0 : index
    %102 = vector.load %arg8[%c0_121, %c0_122] : memref<100x320xf32, #tpu.memory_space<vmem>>, vector<100x320xf32>
    %cst = arith.constant dense<0.000000e+00> : vector<8x320xf32>
    %103 = tpu.matmul %101, %102, %cst {dimension_numbers = #tpu.dot_dimension_numbers<[1], [0], [0], [1], [0, 0, 1, 1], [], []>} : vector<8x100xf32>, vector<100x320xf32>, vector<8x320xf32> -> vector<8x320xf32>
    %104 = arith.index_cast %arg0 : i32 to index
    %c0_123 = arith.constant 0 : index
    %c0_124 = arith.constant 0 : index
    %105 = vector.load %arg9[%104, %c0_123, %c0_124] : memref<2x8x320xf32, #tpu.memory_space<vmem>>, vector<1x8x320xf32>
    %106 = vector.shape_cast %105 : vector<1x8x320xf32> to vector<8x320xf32>
    %107 = vector.shape_cast %103 : vector<8x320xf32> to vector<1x8x320xf32>
    tpu.vector_store %arg9[%104, %c0_123, %c0_124], %107 {strides = array<i32>} : memref<2x8x320xf32, #tpu.memory_space<vmem>>, vector<1x8x320xf32>,
    %c0_125 = arith.constant 0 : index
    %c0_126 = arith.constant 0 : index
    %108 = vector.load %arg3[%c0_125, %c0_126] : memref<1x320xf32, #tpu.memory_space<vmem>>, vector<1x320xf32>
    %109 = vector.broadcast %108 : vector<1x320xf32> to vector<8x320xf32>
    %110 = arith.mulf %103, %109 : vector<8x320xf32>
    %c0_127 = arith.constant 0 : index
    %c0_128 = arith.constant 0 : index
    %111 = vector.load %arg10[%c0_127, %c0_128] : memref<8x2xf32, #tpu.memory_space<vmem>>, vector<8x1xf32>
    %cst_129 = arith.constant dense<0.000000e+00> : vector<8xf32>
    %112 = vector.multi_reduction <add>, %110, %cst_129 [1] : vector<8x320xf32> to vector<8xf32>
    %113 = vector.shape_cast %112 : vector<8xf32> to vector<8x1xf32>
    %114 = arith.addf %111, %113 : vector<8x1xf32>
    %c0_130 = arith.constant 0 : index
    %c0_131 = arith.constant 0 : index
    %115 = vector.load %arg10[%c0_130, %c0_131] : memref<8x2xf32, #tpu.memory_space<vmem>>, vector<8x1xf32>
    tpu.vector_store %arg10[%c0_130, %c0_131], %114 {strides = array<i32>} : memref<8x2xf32, #tpu.memory_space<vmem>>, vector<8x1xf32>,
    %c0_132 = arith.constant 0 : index
    %c1_133 = arith.constant 1 : index
    %116 = vector.load %arg10[%c0_132, %c1_133] : memref<8x2xf32, #tpu.memory_space<vmem>>, vector<8x1xf32>
    %117 = arith.mulf %103, %110 : vector<8x320xf32>
    %cst_134 = arith.constant dense<0.000000e+00> : vector<8xf32>
    %118 = vector.multi_reduction <add>, %117, %cst_134 [1] : vector<8x320xf32> to vector<8xf32>
    %119 = vector.shape_cast %118 : vector<8xf32> to vector<8x1xf32>
    %120 = arith.addf %116, %119 : vector<8x1xf32>
    %c0_135 = arith.constant 0 : index
    %c1_136 = arith.constant 1 : index
    %121 = vector.load %arg10[%c0_135, %c1_136] : memref<8x2xf32, #tpu.memory_space<vmem>>, vector<8x1xf32>
    tpu.vector_store %arg10[%c0_135, %c1_136], %120 {strides = array<i32>} : memref<8x2xf32, #tpu.memory_space<vmem>>, vector<8x1xf32>,
    %c1_i32 = arith.constant 1 : i32
    %122 = arith.cmpi eq, %arg0, %c1_i32 : i32
    %123 = arith.extui %122 : i1 to i32
    %c0_i32_137 = arith.constant 0 : i32
    %124 = arith.cmpi ne, %123, %c0_i32_137 : i32
    scf.if %124 {
      %c0_138 = arith.constant 0 : index
      %c0_139 = arith.constant 0 : index
      %125 = vector.load %arg10[%c0_138, %c0_139] : memref<8x2xf32, #tpu.memory_space<vmem>>, vector<8x1xf32>
      %cst_140 = arith.constant 0.001953125 : f32
      %126 = vector.broadcast %cst_140 : f32 to vector<8x1xf32>
      %127 = arith.mulf %125, %126 : vector<8x1xf32>
      %c0_141 = arith.constant 0 : index
      %c1_142 = arith.constant 1 : index
      %128 = vector.load %arg10[%c0_141, %c1_142] : memref<8x2xf32, #tpu.memory_space<vmem>>, vector<8x1xf32>
      %cst_143 = arith.constant 0.001953125 : f32
      %129 = vector.broadcast %cst_143 : f32 to vector<8x1xf32>
      %130 = arith.mulf %128, %129 : vector<8x1xf32>
      %131 = arith.mulf %127, %127 : vector<8x1xf32>
      %132 = arith.subf %130, %131 : vector<8x1xf32>
      %c0_144 = arith.constant 0 : index
      %c0_145 = arith.constant 0 : index
      %133 = vector.load %arg4[%c0_144, %c0_145] : memref<8x1xf32, #tpu.memory_space<vmem>>, vector<8x1xf32>
      %cst_146 = arith.constant 9.99999974E-6 : f32
      %134 = vector.broadcast %cst_146 : f32 to vector<8x1xf32>
      %135 = arith.addf %132, %134 : vector<8x1xf32>
      %136 = math.rsqrt %135 : vector<8x1xf32>
      %137 = arith.mulf %133, %136 : vector<8x1xf32>
      %c0_147 = arith.constant 0 : index
      %c0_148 = arith.constant 0 : index
      %138 = vector.load %arg5[%c0_147, %c0_148] : memref<8x1xf32, #tpu.memory_space<vmem>>, vector<8x1xf32>
      %139 = arith.mulf %127, %137 : vector<8x1xf32>
      %140 = arith.subf %138, %139 : vector<8x1xf32>
      %c0_149 = arith.constant 0 : index
      %c0_150 = arith.constant 0 : index
      %c0_151 = arith.constant 0 : index
      %141 = vector.load %arg9[%c0_149, %c0_150, %c0_151] : memref<2x8x320xf32, #tpu.memory_space<vmem>>, vector<1x8x320xf32>
      %142 = vector.shape_cast %141 : vector<1x8x320xf32> to vector<8x320xf32>
      %143 = vector.broadcast %137 : vector<8x1xf32> to vector<8x320xf32>
      %144 = arith.mulf %142, %143 : vector<8x320xf32>
      %145 = vector.broadcast %140 : vector<8x1xf32> to vector<8x320xf32>
      %146 = arith.addf %144, %145 : vector<8x320xf32>
      %cst_152 = arith.constant 0.000000e+00 : f32
      %147 = vector.broadcast %cst_152 : f32 to vector<8x320xf32>
      %148 = arith.maximumf %146, %147 : vector<8x320xf32>
      %149 = vector.extract_strided_slice %148 {offsets = [0, 0], sizes = [8, 16], strides = [1, 1]} : vector<8x320xf32> to vector<8x16xf32>
      %c0_153 = arith.constant 0 : index
      %c0_154 = arith.constant 0 : index
      %c0_155 = arith.constant 0 : index
      %150 = vector.load %arg6[%c0_153, %c0_154, %c0_155] : memref<2x8x256xf32, #tpu.memory_space<vmem>>, vector<1x8x16xf32>
      %151 = vector.shape_cast %150 : vector<1x8x16xf32> to vector<8x16xf32>
      %152 = vector.shape_cast %149 : vector<8x16xf32> to vector<1x8x16xf32>
      tpu.vector_store %arg6[%c0_153, %c0_154, %c0_155], %152 {strides = array<i32>} : memref<2x8x256xf32, #tpu.memory_space<vmem>>, vector<1x8x16xf32>,
      %153 = vector.extract_strided_slice %148 {offsets = [0, 20], sizes = [8, 16], strides = [1, 1]} : vector<8x320xf32> to vector<8x16xf32>
      %c0_156 = arith.constant 0 : index
      %c0_157 = arith.constant 0 : index
      %c16_158 = arith.constant 16 : index
      %154 = vector.load %arg6[%c0_156, %c0_157, %c16_158] : memref<2x8x256xf32, #tpu.memory_space<vmem>>, vector<1x8x16xf32>
      %155 = vector.shape_cast %154 : vector<1x8x16xf32> to vector<8x16xf32>
      %156 = vector.shape_cast %153 : vector<8x16xf32> to vector<1x8x16xf32>
      tpu.vector_store %arg6[%c0_156, %c0_157, %c16_158], %156 {strides = array<i32>} : memref<2x8x256xf32, #tpu.memory_space<vmem>>, vector<1x8x16xf32>,
      %157 = vector.extract_strided_slice %148 {offsets = [0, 40], sizes = [8, 16], strides = [1, 1]} : vector<8x320xf32> to vector<8x16xf32>
      %c0_159 = arith.constant 0 : index
      %c0_160 = arith.constant 0 : index
      %c32_161 = arith.constant 32 : index
      %158 = vector.load %arg6[%c0_159, %c0_160, %c32_161] : memref<2x8x256xf32, #tpu.memory_space<vmem>>, vector<1x8x16xf32>
      %159 = vector.shape_cast %158 : vector<1x8x16xf32> to vector<8x16xf32>
      %160 = vector.shape_cast %157 : vector<8x16xf32> to vector<1x8x16xf32>
      tpu.vector_store %arg6[%c0_159, %c0_160, %c32_161], %160 {strides = array<i32>} : memref<2x8x256xf32, #tpu.memory_space<vmem>>, vector<1x8x16xf32>,
      %161 = vector.extract_strided_slice %148 {offsets = [0, 60], sizes = [8, 16], strides = [1, 1]} : vector<8x320xf32> to vector<8x16xf32>
      %c0_162 = arith.constant 0 : index
      %c0_163 = arith.constant 0 : index
      %c48_164 = arith.constant 48 : index
      %162 = vector.load %arg6[%c0_162, %c0_163, %c48_164] : memref<2x8x256xf32, #tpu.memory_space<vmem>>, vector<1x8x16xf32>
      %163 = vector.shape_cast %162 : vector<1x8x16xf32> to vector<8x16xf32>
      %164 = vector.shape_cast %161 : vector<8x16xf32> to vector<1x8x16xf32>
      tpu.vector_store %arg6[%c0_162, %c0_163, %c48_164], %164 {strides = array<i32>} : memref<2x8x256xf32, #tpu.memory_space<vmem>>, vector<1x8x16xf32>,
      %165 = vector.extract_strided_slice %148 {offsets = [0, 80], sizes = [8, 16], strides = [1, 1]} : vector<8x320xf32> to vector<8x16xf32>
      %c0_165 = arith.constant 0 : index
      %c0_166 = arith.constant 0 : index
      %c64_167 = arith.constant 64 : index
      %166 = vector.load %arg6[%c0_165, %c0_166, %c64_167] : memref<2x8x256xf32, #tpu.memory_space<vmem>>, vector<1x8x16xf32>
      %167 = vector.shape_cast %166 : vector<1x8x16xf32> to vector<8x16xf32>
      %168 = vector.shape_cast %165 : vector<8x16xf32> to vector<1x8x16xf32>
      tpu.vector_store %arg6[%c0_165, %c0_166, %c64_167], %168 {strides = array<i32>} : memref<2x8x256xf32, #tpu.memory_space<vmem>>, vector<1x8x16xf32>,
      %169 = vector.extract_strided_slice %148 {offsets = [0, 100], sizes = [8, 16], strides = [1, 1]} : vector<8x320xf32> to vector<8x16xf32>
      %c0_168 = arith.constant 0 : index
      %c0_169 = arith.constant 0 : index
      %c80_170 = arith.constant 80 : index
      %170 = vector.load %arg6[%c0_168, %c0_169, %c80_170] : memref<2x8x256xf32, #tpu.memory_space<vmem>>, vector<1x8x16xf32>
      %171 = vector.shape_cast %170 : vector<1x8x16xf32> to vector<8x16xf32>
      %172 = vector.shape_cast %169 : vector<8x16xf32> to vector<1x8x16xf32>
      tpu.vector_store %arg6[%c0_168, %c0_169, %c80_170], %172 {strides = array<i32>} : memref<2x8x256xf32, #tpu.memory_space<vmem>>, vector<1x8x16xf32>,
      %173 = vector.extract_strided_slice %148 {offsets = [0, 120], sizes = [8, 16], strides = [1, 1]} : vector<8x320xf32> to vector<8x16xf32>
      %c0_171 = arith.constant 0 : index
      %c0_172 = arith.constant 0 : index
      %c96_173 = arith.constant 96 : index
      %174 = vector.load %arg6[%c0_171, %c0_172, %c96_173] : memref<2x8x256xf32, #tpu.memory_space<vmem>>, vector<1x8x16xf32>
      %175 = vector.shape_cast %174 : vector<1x8x16xf32> to vector<8x16xf32>
      %176 = vector.shape_cast %173 : vector<8x16xf32> to vector<1x8x16xf32>
      tpu.vector_store %arg6[%c0_171, %c0_172, %c96_173], %176 {strides = array<i32>} : memref<2x8x256xf32, #tpu.memory_space<vmem>>, vector<1x8x16xf32>,
      %177 = vector.extract_strided_slice %148 {offsets = [0, 140], sizes = [8, 16], strides = [1, 1]} : vector<8x320xf32> to vector<8x16xf32>
      %c0_174 = arith.constant 0 : index
      %c0_175 = arith.constant 0 : index
      %c112_176 = arith.constant 112 : index
      %178 = vector.load %arg6[%c0_174, %c0_175, %c112_176] : memref<2x8x256xf32, #tpu.memory_space<vmem>>, vector<1x8x16xf32>
      %179 = vector.shape_cast %178 : vector<1x8x16xf32> to vector<8x16xf32>
      %180 = vector.shape_cast %177 : vector<8x16xf32> to vector<1x8x16xf32>
      tpu.vector_store %arg6[%c0_174, %c0_175, %c112_176], %180 {strides = array<i32>} : memref<2x8x256xf32, #tpu.memory_space<vmem>>, vector<1x8x16xf32>,
      %181 = vector.extract_strided_slice %148 {offsets = [0, 160], sizes = [8, 16], strides = [1, 1]} : vector<8x320xf32> to vector<8x16xf32>
      %c0_177 = arith.constant 0 : index
      %c0_178 = arith.constant 0 : index
      %c128_179 = arith.constant 128 : index
      %182 = vector.load %arg6[%c0_177, %c0_178, %c128_179] : memref<2x8x256xf32, #tpu.memory_space<vmem>>, vector<1x8x16xf32>
      %183 = vector.shape_cast %182 : vector<1x8x16xf32> to vector<8x16xf32>
      %184 = vector.shape_cast %181 : vector<8x16xf32> to vector<1x8x16xf32>
      tpu.vector_store %arg6[%c0_177, %c0_178, %c128_179], %184 {strides = array<i32>} : memref<2x8x256xf32, #tpu.memory_space<vmem>>, vector<1x8x16xf32>,
      %185 = vector.extract_strided_slice %148 {offsets = [0, 180], sizes = [8, 16], strides = [1, 1]} : vector<8x320xf32> to vector<8x16xf32>
      %c0_180 = arith.constant 0 : index
      %c0_181 = arith.constant 0 : index
      %c144_182 = arith.constant 144 : index
      %186 = vector.load %arg6[%c0_180, %c0_181, %c144_182] : memref<2x8x256xf32, #tpu.memory_space<vmem>>, vector<1x8x16xf32>
      %187 = vector.shape_cast %186 : vector<1x8x16xf32> to vector<8x16xf32>
      %188 = vector.shape_cast %185 : vector<8x16xf32> to vector<1x8x16xf32>
      tpu.vector_store %arg6[%c0_180, %c0_181, %c144_182], %188 {strides = array<i32>} : memref<2x8x256xf32, #tpu.memory_space<vmem>>, vector<1x8x16xf32>,
      %189 = vector.extract_strided_slice %148 {offsets = [0, 200], sizes = [8, 16], strides = [1, 1]} : vector<8x320xf32> to vector<8x16xf32>
      %c0_183 = arith.constant 0 : index
      %c0_184 = arith.constant 0 : index
      %c160_185 = arith.constant 160 : index
      %190 = vector.load %arg6[%c0_183, %c0_184, %c160_185] : memref<2x8x256xf32, #tpu.memory_space<vmem>>, vector<1x8x16xf32>
      %191 = vector.shape_cast %190 : vector<1x8x16xf32> to vector<8x16xf32>
      %192 = vector.shape_cast %189 : vector<8x16xf32> to vector<1x8x16xf32>
      tpu.vector_store %arg6[%c0_183, %c0_184, %c160_185], %192 {strides = array<i32>} : memref<2x8x256xf32, #tpu.memory_space<vmem>>, vector<1x8x16xf32>,
      %193 = vector.extract_strided_slice %148 {offsets = [0, 220], sizes = [8, 16], strides = [1, 1]} : vector<8x320xf32> to vector<8x16xf32>
      %c0_186 = arith.constant 0 : index
      %c0_187 = arith.constant 0 : index
      %c176_188 = arith.constant 176 : index
      %194 = vector.load %arg6[%c0_186, %c0_187, %c176_188] : memref<2x8x256xf32, #tpu.memory_space<vmem>>, vector<1x8x16xf32>
      %195 = vector.shape_cast %194 : vector<1x8x16xf32> to vector<8x16xf32>
      %196 = vector.shape_cast %193 : vector<8x16xf32> to vector<1x8x16xf32>
      tpu.vector_store %arg6[%c0_186, %c0_187, %c176_188], %196 {strides = array<i32>} : memref<2x8x256xf32, #tpu.memory_space<vmem>>, vector<1x8x16xf32>,
      %197 = vector.extract_strided_slice %148 {offsets = [0, 240], sizes = [8, 16], strides = [1, 1]} : vector<8x320xf32> to vector<8x16xf32>
      %c0_189 = arith.constant 0 : index
      %c0_190 = arith.constant 0 : index
      %c192_191 = arith.constant 192 : index
      %198 = vector.load %arg6[%c0_189, %c0_190, %c192_191] : memref<2x8x256xf32, #tpu.memory_space<vmem>>, vector<1x8x16xf32>
      %199 = vector.shape_cast %198 : vector<1x8x16xf32> to vector<8x16xf32>
      %200 = vector.shape_cast %197 : vector<8x16xf32> to vector<1x8x16xf32>
      tpu.vector_store %arg6[%c0_189, %c0_190, %c192_191], %200 {strides = array<i32>} : memref<2x8x256xf32, #tpu.memory_space<vmem>>, vector<1x8x16xf32>,
      %201 = vector.extract_strided_slice %148 {offsets = [0, 260], sizes = [8, 16], strides = [1, 1]} : vector<8x320xf32> to vector<8x16xf32>
      %c0_192 = arith.constant 0 : index
      %c0_193 = arith.constant 0 : index
      %c208_194 = arith.constant 208 : index
      %202 = vector.load %arg6[%c0_192, %c0_193, %c208_194] : memref<2x8x256xf32, #tpu.memory_space<vmem>>, vector<1x8x16xf32>
      %203 = vector.shape_cast %202 : vector<1x8x16xf32> to vector<8x16xf32>
      %204 = vector.shape_cast %201 : vector<8x16xf32> to vector<1x8x16xf32>
      tpu.vector_store %arg6[%c0_192, %c0_193, %c208_194], %204 {strides = array<i32>} : memref<2x8x256xf32, #tpu.memory_space<vmem>>, vector<1x8x16xf32>,
      %205 = vector.extract_strided_slice %148 {offsets = [0, 280], sizes = [8, 16], strides = [1, 1]} : vector<8x320xf32> to vector<8x16xf32>
      %c0_195 = arith.constant 0 : index
      %c0_196 = arith.constant 0 : index
      %c224_197 = arith.constant 224 : index
      %206 = vector.load %arg6[%c0_195, %c0_196, %c224_197] : memref<2x8x256xf32, #tpu.memory_space<vmem>>, vector<1x8x16xf32>
      %207 = vector.shape_cast %206 : vector<1x8x16xf32> to vector<8x16xf32>
      %208 = vector.shape_cast %205 : vector<8x16xf32> to vector<1x8x16xf32>
      tpu.vector_store %arg6[%c0_195, %c0_196, %c224_197], %208 {strides = array<i32>} : memref<2x8x256xf32, #tpu.memory_space<vmem>>, vector<1x8x16xf32>,
      %209 = vector.extract_strided_slice %148 {offsets = [0, 300], sizes = [8, 16], strides = [1, 1]} : vector<8x320xf32> to vector<8x16xf32>
      %c0_198 = arith.constant 0 : index
      %c0_199 = arith.constant 0 : index
      %c240_200 = arith.constant 240 : index
      %210 = vector.load %arg6[%c0_198, %c0_199, %c240_200] : memref<2x8x256xf32, #tpu.memory_space<vmem>>, vector<1x8x16xf32>
      %211 = vector.shape_cast %210 : vector<1x8x16xf32> to vector<8x16xf32>
      %212 = vector.shape_cast %209 : vector<8x16xf32> to vector<1x8x16xf32>
      tpu.vector_store %arg6[%c0_198, %c0_199, %c240_200], %212 {strides = array<i32>} : memref<2x8x256xf32, #tpu.memory_space<vmem>>, vector<1x8x16xf32>,
      %c1_201 = arith.constant 1 : index
      %c0_202 = arith.constant 0 : index
      %c0_203 = arith.constant 0 : index
      %213 = vector.load %arg9[%c1_201, %c0_202, %c0_203] : memref<2x8x320xf32, #tpu.memory_space<vmem>>, vector<1x8x320xf32>
      %214 = vector.shape_cast %213 : vector<1x8x320xf32> to vector<8x320xf32>
      %215 = vector.broadcast %137 : vector<8x1xf32> to vector<8x320xf32>
      %216 = arith.mulf %214, %215 : vector<8x320xf32>
      %217 = vector.broadcast %140 : vector<8x1xf32> to vector<8x320xf32>
      %218 = arith.addf %216, %217 : vector<8x320xf32>
      %cst_204 = arith.constant 0.000000e+00 : f32
      %219 = vector.broadcast %cst_204 : f32 to vector<8x320xf32>
      %220 = arith.maximumf %218, %219 : vector<8x320xf32>
      %221 = vector.extract_strided_slice %220 {offsets = [0, 0], sizes = [8, 16], strides = [1, 1]} : vector<8x320xf32> to vector<8x16xf32>
      %c1_205 = arith.constant 1 : index
      %c0_206 = arith.constant 0 : index
      %c0_207 = arith.constant 0 : index
      %222 = vector.load %arg6[%c1_205, %c0_206, %c0_207] : memref<2x8x256xf32, #tpu.memory_space<vmem>>, vector<1x8x16xf32>
      %223 = vector.shape_cast %222 : vector<1x8x16xf32> to vector<8x16xf32>
      %224 = vector.shape_cast %221 : vector<8x16xf32> to vector<1x8x16xf32>
      tpu.vector_store %arg6[%c1_205, %c0_206, %c0_207], %224 {strides = array<i32>} : memref<2x8x256xf32, #tpu.memory_space<vmem>>, vector<1x8x16xf32>,
      %225 = vector.extract_strided_slice %220 {offsets = [0, 20], sizes = [8, 16], strides = [1, 1]} : vector<8x320xf32> to vector<8x16xf32>
      %c1_208 = arith.constant 1 : index
      %c0_209 = arith.constant 0 : index
      %c16_210 = arith.constant 16 : index
      %226 = vector.load %arg6[%c1_208, %c0_209, %c16_210] : memref<2x8x256xf32, #tpu.memory_space<vmem>>, vector<1x8x16xf32>
      %227 = vector.shape_cast %226 : vector<1x8x16xf32> to vector<8x16xf32>
      %228 = vector.shape_cast %225 : vector<8x16xf32> to vector<1x8x16xf32>
      tpu.vector_store %arg6[%c1_208, %c0_209, %c16_210], %228 {strides = array<i32>} : memref<2x8x256xf32, #tpu.memory_space<vmem>>, vector<1x8x16xf32>,
      %229 = vector.extract_strided_slice %220 {offsets = [0, 40], sizes = [8, 16], strides = [1, 1]} : vector<8x320xf32> to vector<8x16xf32>
      %c1_211 = arith.constant 1 : index
      %c0_212 = arith.constant 0 : index
      %c32_213 = arith.constant 32 : index
      %230 = vector.load %arg6[%c1_211, %c0_212, %c32_213] : memref<2x8x256xf32, #tpu.memory_space<vmem>>, vector<1x8x16xf32>
      %231 = vector.shape_cast %230 : vector<1x8x16xf32> to vector<8x16xf32>
      %232 = vector.shape_cast %229 : vector<8x16xf32> to vector<1x8x16xf32>
      tpu.vector_store %arg6[%c1_211, %c0_212, %c32_213], %232 {strides = array<i32>} : memref<2x8x256xf32, #tpu.memory_space<vmem>>, vector<1x8x16xf32>,
      %233 = vector.extract_strided_slice %220 {offsets = [0, 60], sizes = [8, 16], strides = [1, 1]} : vector<8x320xf32> to vector<8x16xf32>
      %c1_214 = arith.constant 1 : index
      %c0_215 = arith.constant 0 : index
      %c48_216 = arith.constant 48 : index
      %234 = vector.load %arg6[%c1_214, %c0_215, %c48_216] : memref<2x8x256xf32, #tpu.memory_space<vmem>>, vector<1x8x16xf32>
      %235 = vector.shape_cast %234 : vector<1x8x16xf32> to vector<8x16xf32>
      %236 = vector.shape_cast %233 : vector<8x16xf32> to vector<1x8x16xf32>
      tpu.vector_store %arg6[%c1_214, %c0_215, %c48_216], %236 {strides = array<i32>} : memref<2x8x256xf32, #tpu.memory_space<vmem>>, vector<1x8x16xf32>,
      %237 = vector.extract_strided_slice %220 {offsets = [0, 80], sizes = [8, 16], strides = [1, 1]} : vector<8x320xf32> to vector<8x16xf32>
      %c1_217 = arith.constant 1 : index
      %c0_218 = arith.constant 0 : index
      %c64_219 = arith.constant 64 : index
      %238 = vector.load %arg6[%c1_217, %c0_218, %c64_219] : memref<2x8x256xf32, #tpu.memory_space<vmem>>, vector<1x8x16xf32>
      %239 = vector.shape_cast %238 : vector<1x8x16xf32> to vector<8x16xf32>
      %240 = vector.shape_cast %237 : vector<8x16xf32> to vector<1x8x16xf32>
      tpu.vector_store %arg6[%c1_217, %c0_218, %c64_219], %240 {strides = array<i32>} : memref<2x8x256xf32, #tpu.memory_space<vmem>>, vector<1x8x16xf32>,
      %241 = vector.extract_strided_slice %220 {offsets = [0, 100], sizes = [8, 16], strides = [1, 1]} : vector<8x320xf32> to vector<8x16xf32>
      %c1_220 = arith.constant 1 : index
      %c0_221 = arith.constant 0 : index
      %c80_222 = arith.constant 80 : index
      %242 = vector.load %arg6[%c1_220, %c0_221, %c80_222] : memref<2x8x256xf32, #tpu.memory_space<vmem>>, vector<1x8x16xf32>
      %243 = vector.shape_cast %242 : vector<1x8x16xf32> to vector<8x16xf32>
      %244 = vector.shape_cast %241 : vector<8x16xf32> to vector<1x8x16xf32>
      tpu.vector_store %arg6[%c1_220, %c0_221, %c80_222], %244 {strides = array<i32>} : memref<2x8x256xf32, #tpu.memory_space<vmem>>, vector<1x8x16xf32>,
      %245 = vector.extract_strided_slice %220 {offsets = [0, 120], sizes = [8, 16], strides = [1, 1]} : vector<8x320xf32> to vector<8x16xf32>
      %c1_223 = arith.constant 1 : index
      %c0_224 = arith.constant 0 : index
      %c96_225 = arith.constant 96 : index
      %246 = vector.load %arg6[%c1_223, %c0_224, %c96_225] : memref<2x8x256xf32, #tpu.memory_space<vmem>>, vector<1x8x16xf32>
      %247 = vector.shape_cast %246 : vector<1x8x16xf32> to vector<8x16xf32>
      %248 = vector.shape_cast %245 : vector<8x16xf32> to vector<1x8x16xf32>
      tpu.vector_store %arg6[%c1_223, %c0_224, %c96_225], %248 {strides = array<i32>} : memref<2x8x256xf32, #tpu.memory_space<vmem>>, vector<1x8x16xf32>,
      %249 = vector.extract_strided_slice %220 {offsets = [0, 140], sizes = [8, 16], strides = [1, 1]} : vector<8x320xf32> to vector<8x16xf32>
      %c1_226 = arith.constant 1 : index
      %c0_227 = arith.constant 0 : index
      %c112_228 = arith.constant 112 : index
      %250 = vector.load %arg6[%c1_226, %c0_227, %c112_228] : memref<2x8x256xf32, #tpu.memory_space<vmem>>, vector<1x8x16xf32>
      %251 = vector.shape_cast %250 : vector<1x8x16xf32> to vector<8x16xf32>
      %252 = vector.shape_cast %249 : vector<8x16xf32> to vector<1x8x16xf32>
      tpu.vector_store %arg6[%c1_226, %c0_227, %c112_228], %252 {strides = array<i32>} : memref<2x8x256xf32, #tpu.memory_space<vmem>>, vector<1x8x16xf32>,
      %253 = vector.extract_strided_slice %220 {offsets = [0, 160], sizes = [8, 16], strides = [1, 1]} : vector<8x320xf32> to vector<8x16xf32>
      %c1_229 = arith.constant 1 : index
      %c0_230 = arith.constant 0 : index
      %c128_231 = arith.constant 128 : index
      %254 = vector.load %arg6[%c1_229, %c0_230, %c128_231] : memref<2x8x256xf32, #tpu.memory_space<vmem>>, vector<1x8x16xf32>
      %255 = vector.shape_cast %254 : vector<1x8x16xf32> to vector<8x16xf32>
      %256 = vector.shape_cast %253 : vector<8x16xf32> to vector<1x8x16xf32>
      tpu.vector_store %arg6[%c1_229, %c0_230, %c128_231], %256 {strides = array<i32>} : memref<2x8x256xf32, #tpu.memory_space<vmem>>, vector<1x8x16xf32>,
      %257 = vector.extract_strided_slice %220 {offsets = [0, 180], sizes = [8, 16], strides = [1, 1]} : vector<8x320xf32> to vector<8x16xf32>
      %c1_232 = arith.constant 1 : index
      %c0_233 = arith.constant 0 : index
      %c144_234 = arith.constant 144 : index
      %258 = vector.load %arg6[%c1_232, %c0_233, %c144_234] : memref<2x8x256xf32, #tpu.memory_space<vmem>>, vector<1x8x16xf32>
      %259 = vector.shape_cast %258 : vector<1x8x16xf32> to vector<8x16xf32>
      %260 = vector.shape_cast %257 : vector<8x16xf32> to vector<1x8x16xf32>
      tpu.vector_store %arg6[%c1_232, %c0_233, %c144_234], %260 {strides = array<i32>} : memref<2x8x256xf32, #tpu.memory_space<vmem>>, vector<1x8x16xf32>,
      %261 = vector.extract_strided_slice %220 {offsets = [0, 200], sizes = [8, 16], strides = [1, 1]} : vector<8x320xf32> to vector<8x16xf32>
      %c1_235 = arith.constant 1 : index
      %c0_236 = arith.constant 0 : index
      %c160_237 = arith.constant 160 : index
      %262 = vector.load %arg6[%c1_235, %c0_236, %c160_237] : memref<2x8x256xf32, #tpu.memory_space<vmem>>, vector<1x8x16xf32>
      %263 = vector.shape_cast %262 : vector<1x8x16xf32> to vector<8x16xf32>
      %264 = vector.shape_cast %261 : vector<8x16xf32> to vector<1x8x16xf32>
      tpu.vector_store %arg6[%c1_235, %c0_236, %c160_237], %264 {strides = array<i32>} : memref<2x8x256xf32, #tpu.memory_space<vmem>>, vector<1x8x16xf32>,
      %265 = vector.extract_strided_slice %220 {offsets = [0, 220], sizes = [8, 16], strides = [1, 1]} : vector<8x320xf32> to vector<8x16xf32>
      %c1_238 = arith.constant 1 : index
      %c0_239 = arith.constant 0 : index
      %c176_240 = arith.constant 176 : index
      %266 = vector.load %arg6[%c1_238, %c0_239, %c176_240] : memref<2x8x256xf32, #tpu.memory_space<vmem>>, vector<1x8x16xf32>
      %267 = vector.shape_cast %266 : vector<1x8x16xf32> to vector<8x16xf32>
      %268 = vector.shape_cast %265 : vector<8x16xf32> to vector<1x8x16xf32>
      tpu.vector_store %arg6[%c1_238, %c0_239, %c176_240], %268 {strides = array<i32>} : memref<2x8x256xf32, #tpu.memory_space<vmem>>, vector<1x8x16xf32>,
      %269 = vector.extract_strided_slice %220 {offsets = [0, 240], sizes = [8, 16], strides = [1, 1]} : vector<8x320xf32> to vector<8x16xf32>
      %c1_241 = arith.constant 1 : index
      %c0_242 = arith.constant 0 : index
      %c192_243 = arith.constant 192 : index
      %270 = vector.load %arg6[%c1_241, %c0_242, %c192_243] : memref<2x8x256xf32, #tpu.memory_space<vmem>>, vector<1x8x16xf32>
      %271 = vector.shape_cast %270 : vector<1x8x16xf32> to vector<8x16xf32>
      %272 = vector.shape_cast %269 : vector<8x16xf32> to vector<1x8x16xf32>
      tpu.vector_store %arg6[%c1_241, %c0_242, %c192_243], %272 {strides = array<i32>} : memref<2x8x256xf32, #tpu.memory_space<vmem>>, vector<1x8x16xf32>,
      %273 = vector.extract_strided_slice %220 {offsets = [0, 260], sizes = [8, 16], strides = [1, 1]} : vector<8x320xf32> to vector<8x16xf32>
      %c1_244 = arith.constant 1 : index
      %c0_245 = arith.constant 0 : index
      %c208_246 = arith.constant 208 : index
      %274 = vector.load %arg6[%c1_244, %c0_245, %c208_246] : memref<2x8x256xf32, #tpu.memory_space<vmem>>, vector<1x8x16xf32>
      %275 = vector.shape_cast %274 : vector<1x8x16xf32> to vector<8x16xf32>
      %276 = vector.shape_cast %273 : vector<8x16xf32> to vector<1x8x16xf32>
      tpu.vector_store %arg6[%c1_244, %c0_245, %c208_246], %276 {strides = array<i32>} : memref<2x8x256xf32, #tpu.memory_space<vmem>>, vector<1x8x16xf32>,
      %277 = vector.extract_strided_slice %220 {offsets = [0, 280], sizes = [8, 16], strides = [1, 1]} : vector<8x320xf32> to vector<8x16xf32>
      %c1_247 = arith.constant 1 : index
      %c0_248 = arith.constant 0 : index
      %c224_249 = arith.constant 224 : index
      %278 = vector.load %arg6[%c1_247, %c0_248, %c224_249] : memref<2x8x256xf32, #tpu.memory_space<vmem>>, vector<1x8x16xf32>
      %279 = vector.shape_cast %278 : vector<1x8x16xf32> to vector<8x16xf32>
      %280 = vector.shape_cast %277 : vector<8x16xf32> to vector<1x8x16xf32>
      tpu.vector_store %arg6[%c1_247, %c0_248, %c224_249], %280 {strides = array<i32>} : memref<2x8x256xf32, #tpu.memory_space<vmem>>, vector<1x8x16xf32>,
      %281 = vector.extract_strided_slice %220 {offsets = [0, 300], sizes = [8, 16], strides = [1, 1]} : vector<8x320xf32> to vector<8x16xf32>
      %c1_250 = arith.constant 1 : index
      %c0_251 = arith.constant 0 : index
      %c240_252 = arith.constant 240 : index
      %282 = vector.load %arg6[%c1_250, %c0_251, %c240_252] : memref<2x8x256xf32, #tpu.memory_space<vmem>>, vector<1x8x16xf32>
      %283 = vector.shape_cast %282 : vector<1x8x16xf32> to vector<8x16xf32>
      %284 = vector.shape_cast %281 : vector<8x16xf32> to vector<1x8x16xf32>
      tpu.vector_store %arg6[%c1_250, %c0_251, %c240_252], %284 {strides = array<i32>} : memref<2x8x256xf32, #tpu.memory_space<vmem>>, vector<1x8x16xf32>,
    } else {
    }
    return
  }
  func.func @transform_0(%arg0: i32) -> (i32, i32, i32) {
    %c0_i32 = arith.constant 0 : i32
    %c0_i32_0 = arith.constant 0 : i32
    %c0_i32_1 = arith.constant 0 : i32
    return %arg0, %c0_i32, %c0_i32_0 : i32, i32, i32
  }
  func.func @transform_1(%arg0: i32) -> (i32, i32) {
    %c0_i32 = arith.constant 0 : i32
    %c0_i32_0 = arith.constant 0 : i32
    %c0_i32_1 = arith.constant 0 : i32
    return %c0_i32, %c0_i32_0 : i32, i32
  }
  func.func @transform_2(%arg0: i32) -> (i32, i32) {
    %c0_i32 = arith.constant 0 : i32
    %c0_i32_0 = arith.constant 0 : i32
    %c0_i32_1 = arith.constant 0 : i32
    return %c0_i32, %c0_i32_0 : i32, i32
  }
  func.func @transform_3(%arg0: i32) -> (i32, i32) {
    %c0_i32 = arith.constant 0 : i32
    %c0_i32_0 = arith.constant 0 : i32
    %c0_i32_1 = arith.constant 0 : i32
    return %c0_i32, %c0_i32_0 : i32, i32
  }
  func.func @transform_4(%arg0: i32) -> (i32, i32) {
    %c0_i32 = arith.constant 0 : i32
    %c0_i32_0 = arith.constant 0 : i32
    %c0_i32_1 = arith.constant 0 : i32
    return %c0_i32, %c0_i32_0 : i32, i32
  }
  func.func @transform_5(%arg0: i32) -> (i32, i32, i32) {
    %c0_i32 = arith.constant 0 : i32
    %c0_i32_0 = arith.constant 0 : i32
    %c0_i32_1 = arith.constant 0 : i32
    %c0_i32_2 = arith.constant 0 : i32
    return %c0_i32, %c0_i32_0, %c0_i32_1 : i32, i32, i32
  }
}

</mosaic_0001>

<bundles_post_ra>
// kernel: tpu_custom_call.1
= control target key start
LH: loop header
LB: loop body
LE: loop exit
PB: predicated region body
PF: predicated region fallthrough
CT: control target
= control target key end

     0   :  { %10 = vsyncpa [#allocation7], 0  ;;  %s2068_s0 = inlined_call_operand.vmem [shape: f32[2,4,256], index: 0, kind: input, shape index: {}]   ;;  %s2069_s1 = inlined_call_operand.hbm [shape: f32[8,100], index: 1, kind: input, shape index: {}]   ;;  %s2070_s2 = inlined_call_operand.vmem [shape: f32[1,320], index: 2, kind: input, shape index: {}]   ;;  %s2071_s3 = inlined_call_operand.vmem [shape: f32[8,1], index: 3, kind: input, shape index: {}]   ;;  %s2072_s4 = inlined_call_operand.vmem [shape: f32[8,1], index: 4, kind: input, shape index: {}]   ;;  %s2073_s5 = inlined_call_operand.hbm [shape: f32[2,8,256], index: 5, kind: output, shape index: {}]  }
   0x1   :  { %11 = vsyncpa [#allocation8], 0  ;;  %s1710_s18 = smov 0  }
   0x2 LB: > { %s1716_s19 = sadd.s32 4294967295, %s1616_s18   ;;  %p1383_p0 = scmp.ge.s32.totalorder %s1616_s18, 1  ;;  %s1616_s18 = sphi %s1710_s18, %s17_s18  }
   0x3   : > { %p153_p1 = scmp.lt.s32.totalorder %s1616_s18, 3  ;;  %p1384_p2 = scmp.ne.s32.totalorder %s1716_s19, 0 }
   0x4   : > { %p1459_p4 = scmp.eq.s32.totalorder %s1716_s19, 0  ;;  %s1618_s21 = smov [#allocation6]  }
   0x5   : > { %p1721_p3 = pnand %p1383_p0, %p153_p1  ;;  %s166_s22 = sshll.u32 %s1618_s21, 4  ;;  %s167_s22 = int_to_ptr.vmem [resolvable:$true] %s166_s22 }
   0x6   : > { %s1563_s23 = scalar_lea.vmem %s167_s22, 128  ;;  %p1571_p11 = scmp.lt.s32.totalorder %s167_s22, %s167_s22 }
   0x7   : > { %p1455_p5 = pneg %p1721_p3  ;;  %p1564_p8 = scmp.ne.s32.totalorder %s167_s22, %s1563_s23 }
   0x8   : > { %p1572_p12 = scmp.lt.s32.totalorder %s1563_s23, %s1563_s23 }
   0x9   : > { %p1456_p6 = pnand %p1459_p4, %p1455_p5 }
   0xa   : > { %p1573_p13 = por %p1572_p12, %p1571_p11 }
   0xb   : > { %p1554_p7 = pneg %p1456_p6 }
   0xd   : > { %p1566_p9 = pnand %p1564_p8, %p1554_p7 }
   0xf   : > { %p1567_p10 = pneg %p1566_p9 }
  0x11   : > { %p1574_p0 = pnand %p1573_p13, %p1567_p10 }
  0x13   : > { %1577 = shalt.err (!%p1574_p0)
}
  0x14   : > { %1458 = dma.hbm_to_vmem [thread:$0]  (!%p1456_p6), %s2069_s1, 128, %s167_s22, [#allocation7]  }
  0x15   : > { %196 = sbr.rel (%p1721_p3) target bundleno = 1396 (0x574), region = 40 }
  0x1a   : > { %1607 = dma.done.wait (%p1459_p4), [#allocation7], 128  }
  0x1b   : > { %1609 = vsyncadd (%p1459_p4), [#allocation7], 4294967168  ;;  %p219_p1 = scmp.lt.s32.totalorder %s1716_s19, 1 }
  0x1c   : > { %227 = sbr.rel (%p1384_p2) target bundleno = 37 (0x25), region = 48 }
  0x1d   : > { %s220_s26 = scalar_select %p219_p1, %s1716_s19, 1 }
  0x1f   : > { %s1402_s27 = sshll.u32 %s220_s26, 3 }
  0x20   : > { %s1744_s30 = scalar_lea.vmem %s2068_s0, %s1402_s27 }
  0x21   : > { %vm228_vm0 = vcmask 15360   ;;  %vm231_vm1 = vcmask 1043456   ;;  %vm232_vm2 = vcmask 293892   ;;  %v1619_v0 = vmov 0.0  }
  0x22   : > { %229 = vst.msk [vmem:[#allocation5] sm:$0xff] %vm228_vm0, %v1619_v0  ;;  %230 = vst [vmem:[#allocation2] sm:$0xff] %v1619_v0 }
  0x23   : > { %vm233_vm3 = vmor %vm232_vm2, %vm231_vm1 }
  0x24   : > { %234 = vst.msk [vmem:[#allocation2 + $0x8] sm:$0xff] %vm233_vm3, %v1619_v0 }
  0x25 PF: > { %v235_v1 = vld [vmem:[%s1744_s30] sm:$0xf]  ;;  %s1620_s6 = smov 42   ;;  %s1621_s7 = smov 58   ;;  %v310_v9 = vld [vmem:[%s1744_s30 + $0x4] sm:$0xf] }
  0x26   : > { %v263_v2 = vld [vmem:[%s1744_s30] sm:$0xf]  ;;  %237 = vrot.lane.b32.xlu0 %v235_v1, %s1620_s6  ;;  %s1622_s8 = smov 46   ;;  %s1623_s9 = smov 50   ;;  %v296_v10 = vld [vmem:[%s1744_s30 + $0x4] sm:$0xf] }
  0x27   : > { %265 = vrot.lane.b32.xlu1 %v263_v2, %s1621_s7  ;;  %v242_v3 = vld [vmem:[%s1744_s30] sm:$0xf]  ;;  %s1624_s10 = smov 54   ;;  %s1625_s11 = smov 62   ;;  %v303_v11 = vld [vmem:[%s1744_s30 + $0x4] sm:$0xf] }
  0x28   : > { %v249_v4 = vld [vmem:[%s1744_s30] sm:$0xf]  ;;  %s1626_s12 = smov 66   ;;  %s1627_s13 = smov 70   ;;  %v322_v12 = vld [vmem:[%s1744_s30 + $0x4] sm:$0xf] }
  0x29   : > { %v256_v5 = vld [vmem:[%s1744_s30] sm:$0xf]  ;;  %s1628_s14 = smov 82   ;;  %s1629_s15 = smov 74   ;;  %v329_v13 = vld [vmem:[%s1744_s30 + $0x4] sm:$0xf] }
  0x2a   : > { %244 = vrot.lane.b32.xlu0 %v242_v3, %s1622_s8  ;;  %v275_v6 = vld [vmem:[%s1744_s30] sm:$0xf]  ;;  %s1630_s16 = smov 78   ;;  %s1631_s17 = smov 86   ;;  %v336_v14 = vld [vmem:[%s1744_s30 + $0x4] sm:$0xf] }
  0x2b   : > { %251 = vrot.lane.b32.xlu1 %v249_v4, %s1623_s9  ;;  %v282_v7 = vld [vmem:[%s1744_s30] sm:$0xf]  ;;  %s1632_s20 = smov 90   ;;  %s1633_s21 = smov 94   ;;  %v343_v15 = vld [vmem:[%s1744_s30 + $0x4] sm:$0xf] }
  0x2c   : > { %v289_v8 = vld [vmem:[%s1744_s30] sm:$0xf]  ;;  %v350_v16 = vld [vmem:[%s1744_s30 + $0x4] sm:$0xf]  ;;  %s1634_s22 = smov 98   ;;  %s1635_s23 = smov 102  }
  0x2d   : > { %vm240_vm4 = vcmask 470352   ;;  %vm247_vm5 = vcmask 634352   ;;  %vm254_vm6 = vcmask 798352   ;;  %vm271_vm7 = vcmask 1044432   ;;  %s1636_s24 = smov 44   ;;  %s1637_s25 = smov 45  }
  0x2e   : > { %258 = vrot.lane.b32.xlu0 %v256_v5, %s1624_s10  ;;  %vm272_vm8 = vcmask 80900   ;;  %vm268_vm9 = vcmask 474112   ;;  %vm261_vm10 = vcmask 962352   ;;  %vm280_vm12 = vcmask 240752   ;;  %s1638_s26 = smov 48   ;;  %s1639_s27 = smov 47  }
  0x2f   : > { %277 = vrot.lane.b32.xlu1 %v275_v6, %s1625_s11  ;;  %vm273_vm11 = vmor %vm272_vm8, %vm271_vm7  ;;  %vm287_vm13 = vcmask 404752   ;;  %vm294_vm14 = vcmask 568752   ;;  %vm301_vm15 = vcmask 732752   ;;  %vm318_vm0 = vcmask 1044368   ;;  %s1640_s28 = smov 64   ;;  %s1641_s29 = smov 65  }
  0x30   : > { %vm319_vm1 = vcmask 15364   ;;  %vm315_vm2 = vcmask 670720   ;;  %vm308_vm3 = vcmask 896752   ;;  %vm341_vm7 = vcmask 503152   ;;  %s1642_s30 = smov 67   ;;  %s1643_s6 = smov 68  }
  0x31   : > { %vm348_vm8 = vcmask 667152   ;;  %s1644_s7 = smov 84   ;;  %s1645_s9 = smov 85   ;;  %v1650_v50 = vmov 0.0  }
  0x32   : > { %284 = vrot.lane.b32.xlu0 %v282_v7, %s1626_s12  ;;  %s1646_s10 = smov 87   ;;  %s1647_s11 = smov 88   ;;  %1418 = vmatprep.subr.mxu1 %v1650_v50 }
  0x33   : > { %291 = vrot.lane.b32.xlu1 %v289_v8, %s1627_s13  ;;  %s1648_s13 = smov 104   ;;  %995 = vmatprep.mubr.f32.mxu0 %v1650_v50  ;;  %p1397_p2 = scmp.ne.s32.totalorder %s1716_s19, 1 }
  0x36   : > { %312 = vrot.lane.b32.xlu0 %v310_v9, %s1628_s14  ;;  %s1649_s14 = smov 105  }
  0x37   : > { %298 = vrot.lane.b32.xlu1 %v296_v10, %s1629_s15  ;;  %s1652_s15 = smov 106  }
  0x3a   : > { %305 = vrot.lane.b32.xlu0 %v303_v11, %s1630_s16  ;;  %s1654_s16 = smov 108  }
  0x3b   : > { %324 = vrot.lane.b32.xlu1 %v322_v12, %s1631_s17 }
  0x3e   : > { %331 = vrot.lane.b32.xlu0 %v329_v13, %s1632_s20  ;;  %s1656_s20 = smov 125  }
  0x3f   : > { %338 = vrot.lane.b32.xlu1 %v336_v14, %s1633_s21  ;;  %s1657_s21 = smov 127  }
  0x42   : > { %345 = vrot.lane.b32.xlu0 %v343_v15, %s1634_s22  ;;  %s1403_s22 = smul.u32 24, %s1716_s19 }
  0x43   : > { %352 = vrot.lane.b32.xlu1 %v350_v16, %s1635_s23  ;;  %s1676_s23 = smov (!%p1397_p2), 100  }
  0x98   : > { %v238_v17 = vpop.permute.xlu0 %237 }
  0x99   : > { %v266_v18 = vpop.permute.xlu1 %265  ;;  %241 = vst.msk [vmem:[#allocation2] sm:$0xf] %vm240_vm4, %v238_v17  ;;  %vm320_vm4 = vmor %vm319_vm1, %vm318_vm0  ;;  %vm666_vm0 = vcmask 556032   ;;  %vm625_vm1 = vcmask 695296  }
  0x9a   : > { %v267_v21 = vrot.slane %v266_v18, 4 }
  0x9c   : > { %v245_v19 = vpop.permute.xlu0 %244  ;;  %v269_v24 = vsel %vm268_vm9, %v267_v21, %v266_v18  ;;  %vm355_vm9 = vcmask 831152  }
  0x9d   : > { %v252_v20 = vpop.permute.xlu1 %251  ;;  %248 = vst.msk [vmem:[#allocation2] sm:$0xf] %vm247_vm5, %v245_v19  ;;  %vm327_vm5 = vcmask 175152  }
  0x9e   : > { %255 = vst.msk [vmem:[#allocation2] sm:$0xf] %vm254_vm6, %v252_v20  ;;  %vm334_vm6 = vcmask 339152  }
  0xa0   : > { %v259_v22 = vpop.permute.xlu0 %258 }
  0xa1   : > { %v278_v23 = vpop.permute.xlu1 %277  ;;  %262 = vst.msk [vmem:[#allocation2] sm:$0xf] %vm261_vm10, %v259_v22  ;;  %vm364_vm10 = vcmask 519168  }
  0xa2   : > { %274 = vst.msk [vmem:[#allocation2] sm:$0xff] %vm273_vm11, %v269_v24  ;;  %vm819_vm11 = vcmask 375808  }
  0xa3   : > { %281 = vst.msk [vmem:[#allocation2 + $0x4] sm:$0xf] %vm280_vm12, %v278_v23  ;;  %vm771_vm12 = vcmask 392192  }
  0xa4   : > { %v285_v25 = vpop.permute.xlu0 %284 }
  0xa5   : > { %v292_v26 = vpop.permute.xlu1 %291  ;;  %288 = vst.msk [vmem:[#allocation2 + $0x4] sm:$0xf] %vm287_vm13, %v285_v25  ;;  %vm795_vm13 = vcmask 384000  }
  0xa6   : > { %295 = vst.msk [vmem:[#allocation2 + $0x4] sm:$0xf] %vm294_vm14, %v292_v26  ;;  %vm748_vm14 = vcmask 523264  }
  0xa8   : > { %v313_v27 = vpop.permute.xlu0 %312 }
  0xa9   : > { %v299_v28 = vpop.permute.xlu1 %298  ;;  %v314_v29 = vrot.slane %v313_v27, 4 }
  0xaa   : > { %302 = vst.msk [vmem:[#allocation2 + $0x4] sm:$0xf] %vm301_vm15, %v299_v28  ;;  %vm707_vm15 = vcmask 539648  }
  0xab   : > { %v316_v32 = vsel %vm315_vm2, %v314_v29, %v313_v27  ;;  %vm1658_vm2 = vmmov 0  }
  0xac   : > { %v306_v30 = vpop.permute.xlu0 %305  ;;  %1444 = vmatprep.mubr.msk.f32.mxu1 %vm1658_vm2, %v1650_v50  ;;  %vm645_vm2 = vcmask 687104  }
  0xad   : > { %v325_v31 = vpop.permute.xlu1 %324  ;;  %309 = vst.msk [vmem:[#allocation2 + $0x4] sm:$0xf] %vm308_vm3, %v306_v30  ;;  %vm584_vm3 = vcmask 711680  }
  0xae   : > { %321 = vst.msk [vmem:[#allocation2 + $0x4] sm:$0xff] %vm320_vm4, %v316_v32  ;;  %vm543_vm4 = vcmask 850944  }
  0xaf   : > { %328 = vst.msk [vmem:[#allocation2 + $0x8] sm:$0xf] %vm327_vm5, %v325_v31  ;;  %vm867_vm5 = vcmask 359424  }
  0xb0   : > { %v332_v33 = vpop.permute.xlu0 %331 }
  0xb1   : > { %v339_v34 = vpop.permute.xlu1 %338  ;;  %335 = vst.msk [vmem:[#allocation2 + $0x8] sm:$0xf] %vm334_vm6, %v332_v33  ;;  %vm843_vm6 = vcmask 367616  }
  0xb2   : > { %342 = vst.msk [vmem:[#allocation2 + $0x8] sm:$0xf] %vm341_vm7, %v339_v34  ;;  %vm727_vm7 = vcmask 531456  }
  0xb4   : > { %v346_v35 = vpop.permute.xlu0 %345 }
  0xb5   : > { %v353_v36 = vpop.permute.xlu1 %352  ;;  %v1767_v37 = vld [vmem:[#allocation2] sm:$0xff]  ;;  %349 = vst.msk [vmem:[#allocation2 + $0x8] sm:$0xf] %vm348_vm8, %v346_v35  ;;  %vm921_vm8 = vcmask 1043456  }
  0xb6   : > { %v357_v38 = vld [vmem:[#allocation2] sm:$0xff]  ;;  %859 = vrot.lane.b32.xlu0 %v1767_v37, %s1636_s24  ;;  %837 = vrot.lane.b32.xlu1 %v1767_v37, %s1637_s25  ;;  %356 = vst.msk [vmem:[#allocation2 + $0x8] sm:$0xf] %vm355_vm9, %v353_v36  ;;  %v1784_v41 = vcombine.high %v1767_v37, %v1767_v37  ;;  %v1796_v42 = vcombine.low %v1767_v37, %v1767_v37  ;;  %vm686_vm9 = vcmask 547840  }
  0xb7   : > { %v360_v39 = vcombine.high %v357_v38, %v357_v38  ;;  %362 = vst [vmem:[#allocation3] sm:$0xf] %v357_v38 }
  0xb9   : > { %363 = vst [vmem:[#allocation3 + $0x8] sm:$0xf] %v360_v39 }
  0xba   : > { %811 = vrot.lane.b32.xlu1 %v1767_v37, %s1622_s8  ;;  %763 = vrot.lane.b32.xlu0 %v1767_v37, %s1638_s26 }
  0xbd   : > { %v358_v40 = vld [vmem:[#allocation2 + $0x8] sm:$0xf] }
  0xbe   : > { %789 = vrot.lane.b32.xlu1 %v1767_v37, %s1639_s27  ;;  %744 = vrot.lane.b32.xlu0 %v1767_v37, %s1640_s28  ;;  %365 = vst.msk [vmem:[#allocation3 + $0x10] sm:$0xf] %vm364_vm10, %v358_v40  ;;  %v854_v43 = vld [vmem:[#allocation2 + $0x8] sm:$0xff] }
  0xbf   : > { %v717_v44 = vld [vmem:[#allocation2 + $0x8] sm:$0xf]  ;;  %v858_v51 = vcombine.high %v854_v43, %v854_v43  ;;  %v834_v54 = vcombine.low %v854_v43, %v854_v43 }
  0xc0   : > { %v676_v45 = vld [vmem:[#allocation2 + $0x8] sm:$0xf] }
  0xc1   : > { %v635_v46 = vld [vmem:[#allocation2 + $0x8] sm:$0xf] }
  0xc2   : > { %813 = vrot.lane.b32.xlu1 %v1784_v41, %s1622_s8  ;;  %721 = vrot.lane.b32.xlu0 %v1767_v37, %s1641_s29  ;;  %v594_v47 = vld [vmem:[#allocation2 + $0x8] sm:$0xf] }
  0xc3   : > { %v553_v48 = vld [vmem:[#allocation2 + $0x8] sm:$0xf] }
  0xc4   : > { %v512_v49 = vld [vmem:[#allocation2 + $0x8] sm:$0xf] }
  0xc5   : > { %v1537_v52 = vld [vmem:[#allocation2 + $0x8] ss:$0 sps:$4 sm:$0xff]  }
  0xc6   : > { %765 = vrot.lane.b32.xlu1 %v1784_v41, %s1638_s26  ;;  %703 = vrot.lane.b32.xlu0 %v1767_v37, %s1626_s12  ;;  %v1538_v53 = vld [vmem:[#allocation2 + $0x8] ss:$0 sps:$4 sm:$0xff]  }
  0xc7   : > { %v1539_v55 = vld [vmem:[#allocation2 + $0x8] ss:$0 sps:$4 sm:$0xff]  }
  0xc8   : > { %v1540_v56 = vld [vmem:[#allocation2 + $0x8] ss:$0 sps:$4 sm:$0xff]  }
  0xc9   : > { %v1541_v57 = vld [vmem:[#allocation2 + $0x8] ss:$0 sps:$4 sm:$0xff]  }
  0xca   : > { %787 = vrot.lane.b32.xlu1 %v1796_v42, %s1639_s27  ;;  %680 = vrot.lane.b32.xlu0 %v1767_v37, %s1642_s30  ;;  %v1542_v58 = vld [vmem:[#allocation2 + $0x8] ss:$0 sps:$4 sm:$0xff]  }
  0xcb   : > { %v471_v59 = vld [vmem:[#allocation2 + $0x8] sm:$0xf] }
  0xcc   : > { %v1543_v62 = vld [vmem:[#allocation2 + $0x8] ss:$0 sps:$4 sm:$0xff]  }
  0xcd   : > { %v430_v3 = vld [vmem:[#allocation2 + $0x8] sm:$0xf] }
  0xce   : > { %742 = vrot.lane.b32.xlu1 %v1796_v42, %s1640_s28  ;;  %662 = vrot.lane.b32.xlu0 %v1767_v37, %s1643_s6  ;;  %v1544_v6 = vld [vmem:[#allocation2 + $0x8] ss:$0 sps:$4 sm:$0xff]  }
  0xcf   : > { %v389_v14 = vld [vmem:[#allocation2 + $0x8] sm:$0xf] }
  0xd0   : > { %v1545_v17 = vld [vmem:[#allocation2 + $0x8] ss:$0 sps:$4 sm:$0xff]  }
  0xd1   : > { %v1546_v24 = vld [vmem:[#allocation2 + $0x8] ss:$0 sps:$4 sm:$0xff]  }
  0xd2   : > { %701 = vrot.lane.b32.xlu1 %v1796_v42, %s1626_s12  ;;  %639 = vrot.lane.b32.xlu0 %v1767_v37, %s1644_s7 }
  0xd6   : > { %660 = vrot.lane.b32.xlu1 %v1796_v42, %s1643_s6  ;;  %621 = vrot.lane.b32.xlu0 %v1767_v37, %s1645_s9 }
  0xda   : > { %619 = vrot.lane.b32.xlu1 %v1796_v42, %s1645_s9  ;;  %598 = vrot.lane.b32.xlu0 %v1767_v37, %s1631_s17 }
  0xde   : > { %580 = vrot.lane.b32.xlu0 %v1767_v37, %s1646_s10  ;;  %578 = vrot.lane.b32.xlu1 %v1796_v42, %s1646_s10 }
  0xe2   : > { %557 = vrot.lane.b32.xlu0 %v1767_v37, %s1647_s11  ;;  %537 = vrot.lane.b32.xlu1 %v1796_v42, %s1648_s13 }
  0xe6   : > { %539 = vrot.lane.b32.xlu0 %v1767_v37, %s1648_s13  ;;  %863 = vrot.lane.b32.xlu1 %v854_v43, %s1636_s24 }
  0xea   : > { %516 = vrot.lane.b32.xlu0 %v1767_v37, %s1649_s14  ;;  %725 = vrot.lane.b32.xlu1 %v717_v44, %s1641_s29 }
  0xee   : > { %861 = vrot.lane.b32.xlu0 %v1784_v41, %s1636_s24  ;;  %841 = vrot.lane.b32.xlu1 %v854_v43, %s1637_s25 }
  0xf2   : > { %835 = vrot.lane.b32.xlu0 %v1796_v42, %s1637_s25  ;;  %684 = vrot.lane.b32.xlu1 %v676_v45, %s1642_s30 }
  0xf6   : > { %723 = vrot.lane.b32.xlu0 %v1784_v41, %s1641_s29  ;;  %793 = vrot.lane.b32.xlu1 %v854_v43, %s1639_s27 }
  0xfa   : > { %682 = vrot.lane.b32.xlu0 %v1784_v41, %s1642_s30  ;;  %643 = vrot.lane.b32.xlu1 %v635_v46, %s1644_s7 }
  0xfe   : > { %641 = vrot.lane.b32.xlu0 %v1784_v41, %s1644_s7  ;;  %602 = vrot.lane.b32.xlu1 %v594_v47, %s1631_s17  ;;  %s1662_s7 = smov (!%p1397_p2), 96  }
 0x102   : > { %600 = vrot.lane.b32.xlu0 %v1784_v41, %s1631_s17  ;;  %561 = vrot.lane.b32.xlu1 %v553_v48, %s1647_s11  ;;  %s1655_s17 = smov 126  }
 0x106   : > { %559 = vrot.lane.b32.xlu0 %v1784_v41, %s1647_s11  ;;  %520 = vrot.lane.b32.xlu1 %v512_v49, %s1649_s14  ;;  %s1665_s11 = smov (!%p1397_p2), 88  }
 0x10a   : > { %518 = vrot.lane.b32.xlu0 %v1784_v41, %s1649_s14  ;;  %865 = vrot.lane.b32.xlu1 %v858_v51, %s1636_s24  ;;  %s1667_s14 = smov (!%p1397_p2), 84  }
 0x10e   : > { %815 = vrot.lane.b32.xlu0 %v854_v43, %s1622_s8  ;;  %746 = vrot.lane.b32.xlu1 %v1537_v52, %s1640_s28 }
 0x112   : > { %767 = vrot.lane.b32.xlu0 %v854_v43, %s1638_s26  ;;  %705 = vrot.lane.b32.xlu1 %v1538_v53, %s1626_s12  ;;  %s1651_s12 = smov 107  }
 0x116   : > { %839 = vrot.lane.b32.xlu0 %v834_v54, %s1637_s25  ;;  %664 = vrot.lane.b32.xlu1 %v1539_v55, %s1643_s6  ;;  %s1074_s25 = scalar_lea.vmem [#allocation4], %s1403_s22  ;;  %s1675_s22 = smov (!%p1397_p2), 68  }
 0x11a   : > { %791 = vrot.lane.b32.xlu0 %v834_v54, %s1639_s27  ;;  %623 = vrot.lane.b32.xlu1 %v1540_v56, %s1645_s9  ;;  %s1661_s27 = smov (!%p1397_p2), 127   ;;  %s1663_s9 = smov (!%p1397_p2), 124  }
 0x11e   : > { %817 = vrot.lane.b32.xlu0 %v858_v51, %s1622_s8  ;;  %582 = vrot.lane.b32.xlu1 %v1541_v57, %s1646_s10  ;;  %s1653_s8 = smov 124   ;;  %s1664_s10 = smov (!%p1397_p2), 92  }
 0x122   : > { %769 = vrot.lane.b32.xlu0 %v858_v51, %s1638_s26  ;;  %541 = vrot.lane.b32.xlu1 %v1542_v58, %s1648_s13  ;;  %s1659_s26 = smov (!%p1397_p2), 1   ;;  %s1666_s13 = smov (!%p1397_p2), 120  }
 0x126   : > { %477 = vrot.lane.b32.xlu0 %v1784_v41, %s1651_s12  ;;  %479 = vrot.lane.b32.xlu1 %v471_v59, %s1651_s12 }
 0x128   : > { %v1868_v60 = vpop.permute.xlu1 %837  ;;  %v1870_v61 = vpop.permute.xlu0 %859 }
 0x12a   : > { %498 = vrot.lane.b32.xlu0 %v1767_v37, %s1652_s15  ;;  %500 = vrot.lane.b32.xlu1 %v1543_v62, %s1652_s15 }
 0x12c   : > { %v812_v63 = vpop.permute.xlu1 %811  ;;  %v764_v0 = vpop.permute.xlu0 %763 }
 0x12e   : > { %475 = vrot.lane.b32.xlu0 %v1767_v37, %s1651_s12  ;;  %496 = vrot.lane.b32.xlu1 %v1796_v42, %s1652_s15  ;;  %s1668_s12 = smov (!%p1397_p2), 116   ;;  %s1669_s15 = smov (!%p1397_p2), 80  }
 0x130   : > { %v1875_v1 = vpop.permute.xlu1 %789  ;;  %v1877_v2 = vpop.permute.xlu0 %744 }
 0x132   : > { %436 = vrot.lane.b32.xlu0 %v1784_v41, %s1653_s8  ;;  %438 = vrot.lane.b32.xlu1 %v430_v3, %s1653_s8 }
 0x134   : > { %v1880_v4 = vpop.permute.xlu1 %813  ;;  %v1882_v5 = vpop.permute.xlu0 %721 }
 0x135   : > { %v820_v7 = vsel %vm819_vm11, %v812_v63, %v1880_v4 }
 0x136   : > { %826 = vst [vmem:[#allocation3 + $0x108] sm:$0xf] %v820_v7  ;;  %457 = vrot.lane.b32.xlu0 %v1767_v37, %s1654_s16  ;;  %459 = vrot.lane.b32.xlu1 %v1544_v6, %s1654_s16 }
 0x138   : > { %v1887_v8 = vpop.permute.xlu1 %765  ;;  %v1889_v9 = vpop.permute.xlu0 %703 }
 0x139   : > { %v772_v10 = vsel %vm771_vm12, %v764_v0, %v1887_v8 }
 0x13a   : > { %778 = vst [vmem:[#allocation3 + $0xf0] sm:$0xf] %v772_v10  ;;  %434 = vrot.lane.b32.xlu0 %v1767_v37, %s1653_s8  ;;  %455 = vrot.lane.b32.xlu1 %v1796_v42, %s1654_s16  ;;  %s1670_s8 = smov (!%p1397_p2), 112   ;;  %s1671_s16 = smov (!%p1397_p2), 104  }
 0x13c   : > { %v788_v11 = vpop.permute.xlu1 %787  ;;  %v1895_v12 = vpop.permute.xlu0 %680 }
 0x13d   : > { %v796_v13 = vsel %vm795_vm13, %v788_v11, %v1875_v1 }
 0x13e   : > { %802 = vst [vmem:[#allocation3 + $0xf0] sm:$0xf0] %v796_v13  ;;  %395 = vrot.lane.b32.xlu0 %v1784_v41, %s1655_s17  ;;  %397 = vrot.lane.b32.xlu1 %v389_v14, %s1655_s17 }
 0x140   : > { %v743_v15 = vpop.permute.xlu1 %742  ;;  %v1900_v16 = vpop.permute.xlu0 %662 }
 0x141   : > { %v749_v18 = vsel %vm748_vm14, %v743_v15, %v1877_v2 }
 0x142   : > { %754 = vst [vmem:[#allocation3 + $0xd8] sm:$0xf0] %v749_v18  ;;  %416 = vrot.lane.b32.xlu0 %v1767_v37, %s1656_s20  ;;  %418 = vrot.lane.b32.xlu1 %v1545_v17, %s1656_s20 }
 0x144   : > { %v702_v19 = vpop.permute.xlu1 %701  ;;  %v1905_v20 = vpop.permute.xlu0 %639 }
 0x145   : > { %v708_v21 = vsel %vm707_vm15, %v702_v19, %v1889_v9 }
 0x146   : > { %713 = vst [vmem:[#allocation3 + $0xc0] sm:$0xf0] %v708_v21  ;;  %393 = vrot.lane.b32.xlu0 %v1767_v37, %s1655_s17  ;;  %414 = vrot.lane.b32.xlu1 %v1796_v42, %s1656_s20  ;;  %s1672_s17 = smov (!%p1397_p2), 108   ;;  %s1673_s20 = smov (!%p1397_p2), 76  }
 0x148   : > { %v661_v22 = vpop.permute.xlu1 %660  ;;  %v1911_v23 = vpop.permute.xlu0 %621 }
 0x149   : > { %v667_v25 = vsel %vm666_vm0, %v661_v22, %v1900_v16 }
 0x14a   : > { %672 = vst [vmem:[#allocation3 + $0xa8] sm:$0xf0] %v667_v25  ;;  %374 = vrot.lane.b32.xlu0 %v1767_v37, %s1657_s21  ;;  %376 = vrot.lane.b32.xlu1 %v1546_v24, %s1657_s21 }
 0x14c   : > { %v620_v26 = vpop.permute.xlu1 %619  ;;  %v1917_v27 = vpop.permute.xlu0 %598 }
 0x14d   : > { %v626_v28 = vsel %vm625_vm1, %v620_v26, %v1911_v23 }
 0x14e   : > { %631 = vst [vmem:[#allocation3 + $0x90] sm:$0xf0] %v626_v28  ;;  %372 = vrot.lane.b32.xlu0 %v1796_v42, %s1657_s21  ;;  %s1674_s21 = smov (!%p1397_p2), 72  }
 0x150   : > { %v579_v29 = vpop.permute.xlu1 %578  ;;  %v1922_v30 = vpop.permute.xlu0 %580 }
 0x151   : > { %v585_v31 = vsel %vm584_vm3, %v579_v29, %v1922_v30 }
 0x152   : > { %590 = vst [vmem:[#allocation3 + $0x78] sm:$0xf0] %v585_v31 }
 0x154   : > { %v538_v32 = vpop.permute.xlu1 %537  ;;  %v1926_v33 = vpop.permute.xlu0 %557 }
 0x158   : > { %v1928_v34 = vpop.permute.xlu1 %863  ;;  %v1930_v35 = vpop.permute.xlu0 %539 }
 0x159   : > { %v544_v36 = vsel %vm543_vm4, %v538_v32, %v1930_v35 }
 0x15a   : > { %549 = vst [vmem:[#allocation3 + $0x60] sm:$0xf0] %v544_v36 }
 0x15c   : > { %v726_v37 = vpop.permute.xlu1 %725  ;;  %v1934_v38 = vpop.permute.xlu0 %516 }
 0x15d   : > { %735 = vst.msk [vmem:[#allocation3 + $0xe8] sm:$0xf] %vm364_vm10, %v726_v37 }
 0x160   : > { %v1937_v39 = vpop.permute.xlu1 %841  ;;  %v862_v40 = vpop.permute.xlu0 %861 }
 0x161   : > { %v868_v41 = vsel %vm867_vm5, %v1870_v61, %v862_v40  ;;  %v869_v42 = vsel %vm867_vm5, %v862_v40, %v1928_v34 }
 0x162   : > { %874 = vst [vmem:[#allocation3 + $0x120] sm:$0xf] %v868_v41  ;;  %875 = vst [vmem:[#allocation3 + $0x128] sm:$0xf] %v869_v42  ;;  %v908_v41 = vld [vmem:[#allocation3 + $0xf0] sm:$0xff] }
 0x164   : > { %v685_v43 = vpop.permute.xlu1 %684  ;;  %v836_v44 = vpop.permute.xlu0 %835 }
 0x165   : > { %694 = vst.msk [vmem:[#allocation3 + $0xd0] sm:$0xf] %vm364_vm10, %v685_v43  ;;  %v844_v45 = vsel %vm843_vm6, %v836_v44, %v1868_v60 }
 0x166   : > { %850 = vst [vmem:[#allocation3 + $0x108] sm:$0xf0] %v844_v45 }
 0x168   : > { %v1946_v46 = vpop.permute.xlu1 %793  ;;  %v724_v47 = vpop.permute.xlu0 %723 }
 0x169   : > { %v728_v48 = vsel %vm727_vm7, %v1882_v5, %v724_v47  ;;  %v729_v49 = vsel %vm727_vm7, %v724_v47, %v726_v37  ;;  %v915_v51 = vld [vmem:[#allocation3 + $0x128] sm:$0xf]  ;;  %v914_v52 = vld [vmem:[#allocation3 + $0x120] sm:$0xf]  ;;  %vm604_vm7 = vcmask 703488  }
 0x16a   : > { %733 = vst [vmem:[#allocation3 + $0xd8] sm:$0xf] %v728_v48  ;;  %734 = vst [vmem:[#allocation3 + $0xe0] sm:$0xf] %v729_v49  ;;  %1391 = vmatprep.subr.msk.mxu0 %vm921_vm8, %v915_v51 }
 0x16b   : > { %1392 = vmatpush1.msk.msra.mxu0 %vm921_vm8, %v914_v52 }
 0x16c   : > { %v644_v53 = vpop.permute.xlu1 %643  ;;  %v683_v54 = vpop.permute.xlu0 %682 }
 0x16d   : > { %653 = vst.msk [vmem:[#allocation3 + $0xb8] sm:$0xf] %vm364_vm10, %v644_v53  ;;  %v687_v55 = vsel %vm686_vm9, %v1895_v12, %v683_v54  ;;  %v688_v56 = vsel %vm686_vm9, %v683_v54, %v685_v43  ;;  %vm563_vm9 = vcmask 719872  }
 0x16e   : > { %692 = vst [vmem:[#allocation3 + $0xc0] sm:$0xf] %v687_v55  ;;  %693 = vst [vmem:[#allocation3 + $0xc8] sm:$0xf] %v688_v56 }
 0x170   : > { %v603_v57 = vpop.permute.xlu1 %602  ;;  %v642_v58 = vpop.permute.xlu0 %641 }
 0x171   : > { %612 = vst.msk [vmem:[#allocation3 + $0xa0] sm:$0xf] %vm364_vm10, %v603_v57  ;;  %v646_v59 = vsel %vm645_vm2, %v1905_v20, %v642_v58  ;;  %v647_v61 = vsel %vm645_vm2, %v642_v58, %v644_v53  ;;  %vm522_vm2 = vcmask 859136   ;;  %v905_v45 = vld [vmem:[#allocation3 + $0xd8] sm:$0xff] }
 0x172   : > { %651 = vst [vmem:[#allocation3 + $0xa8] sm:$0xf] %v646_v59  ;;  %652 = vst [vmem:[#allocation3 + $0xb0] sm:$0xf] %v647_v61 }
 0x174   : > { %v562_v62 = vpop.permute.xlu1 %561  ;;  %v601_v63 = vpop.permute.xlu0 %600 }
 0x175   : > { %571 = vst.msk [vmem:[#allocation3 + $0x88] sm:$0xf] %vm364_vm10, %v562_v62  ;;  %v605_v0 = vsel %vm604_vm7, %v1917_v27, %v601_v63  ;;  %v606_v3 = vsel %vm604_vm7, %v601_v63, %v603_v57  ;;  %vm386_vm7 = vcmask 523268   ;;  %v902_v48 = vld [vmem:[#allocation3 + $0xc0] sm:$0xff] }
 0x176   : > { %610 = vst [vmem:[#allocation3 + $0x90] sm:$0xf] %v605_v0  ;;  %611 = vst [vmem:[#allocation3 + $0x98] sm:$0xf] %v606_v3 }
 0x178   : > { %v521_v5 = vpop.permute.xlu1 %520  ;;  %v560_v6 = vpop.permute.xlu0 %559 }
 0x179   : > { %530 = vst.msk [vmem:[#allocation3 + $0x70] sm:$0xf] %vm364_vm10, %v521_v5  ;;  %v564_v7 = vsel %vm563_vm9, %v1926_v33, %v560_v6  ;;  %v565_v10 = vsel %vm563_vm9, %v560_v6, %v562_v62  ;;  %v899_v53 = vld [vmem:[#allocation3 + $0xa8] sm:$0xff] }
 0x17a   : > { %569 = vst [vmem:[#allocation3 + $0x78] sm:$0xf] %v564_v7  ;;  %570 = vst [vmem:[#allocation3 + $0x80] sm:$0xf] %v565_v10 }
 0x17c   : > { %v866_v11 = vpop.permute.xlu1 %865  ;;  %v519_v12 = vpop.permute.xlu0 %518 }
 0x17d   : > { %v870_v13 = vsel %vm867_vm5, %v1928_v34, %v866_v11  ;;  %v523_v14 = vsel %vm522_vm2, %v1934_v38, %v519_v12  ;;  %v524_v15 = vsel %vm522_vm2, %v519_v12, %v521_v5  ;;  %v896_v57 = vld [vmem:[#allocation3 + $0x90] sm:$0xff]  ;;  %vm1105_vm5 = vcmask 7168  }
 0x17e   : > { %876 = vst.msk [vmem:[#allocation3 + $0x130] sm:$0xf] %vm364_vm10, %v870_v13  ;;  %528 = vst [vmem:[#allocation3 + $0x60] sm:$0xf] %v523_v14 }
 0x17f   : > { %529 = vst [vmem:[#allocation3 + $0x68] sm:$0xf] %v524_v15 }
 0x180   : > { %v747_v17 = vpop.permute.xlu1 %746  ;;  %v816_v18 = vpop.permute.xlu0 %815 }
 0x181   : > { %v750_v19 = vsel %vm748_vm14, %v1877_v2, %v747_v17  ;;  %756 = vst.msk [vmem:[#allocation3 + $0xe8] sm:$0xf0] %vm386_vm7, %v747_v17  ;;  %v821_v20 = vsel %vm819_vm11, %v1880_v4, %v816_v18  ;;  %v893_v63 = vld [vmem:[#allocation3 + $0x78] sm:$0xff] }
 0x182   : > { %755 = vst [vmem:[#allocation3 + $0xe0] sm:$0xf0] %v750_v19  ;;  %827 = vst [vmem:[#allocation3 + $0x110] sm:$0xf] %v821_v20 }
 0x184   : > { %v706_v21 = vpop.permute.xlu1 %705  ;;  %v768_v22 = vpop.permute.xlu0 %767 }
 0x185   : > { %v709_v24 = vsel %vm707_vm15, %v1889_v9, %v706_v21  ;;  %715 = vst.msk [vmem:[#allocation3 + $0xd0] sm:$0xf0] %vm386_vm7, %v706_v21  ;;  %v773_v25 = vsel %vm771_vm12, %v1887_v8, %v768_v22  ;;  %v916_v26 = vld [vmem:[#allocation3 + $0x130] sm:$0xf]  ;;  %v890_v7 = vld [vmem:[#allocation3 + $0x60] sm:$0xff]  ;;  %vm461_vm15 = vcmask 883712  }
 0x186   : > { %714 = vst [vmem:[#allocation3 + $0xc8] sm:$0xf0] %v709_v24  ;;  %779 = vst [vmem:[#allocation3 + $0xf8] sm:$0xf] %v773_v25  ;;  %1419 = vmatpush3.msk.msra.mxu1 %vm921_vm8, %v916_v26 }
 0x187   : > { %1420 = vmatprep.subr.mxu1 %v1650_v50 }
 0x188   : > { %v665_v2 = vpop.permute.xlu1 %664  ;;  %v840_v4 = vpop.permute.xlu0 %839  ;;  %v907_v59 = vld [vmem:[#allocation3 + $0xe8] sm:$0xff] }
 0x189   : > { %v668_v27 = vsel %vm666_vm0, %v1900_v16, %v665_v2  ;;  %674 = vst.msk [vmem:[#allocation3 + $0xb8] sm:$0xf0] %vm386_vm7, %v665_v2  ;;  %v845_v9 = vsel %vm843_vm6, %v1868_v60, %v840_v4  ;;  %v846_v8 = vsel %vm843_vm6, %v840_v4, %v1937_v39  ;;  %v906_v42 = vld [vmem:[#allocation3 + $0xe0] sm:$0xff]  ;;  %vm399_vm0 = vcmask 1031168  }
 0x18a   : > { %673 = vst [vmem:[#allocation3 + $0xb0] sm:$0xf0] %v668_v27  ;;  %851 = vst [vmem:[#allocation3 + $0x110] sm:$0xf0] %v845_v9  ;;  %vm1117_vm6 = vcmask 15368  }
 0x18b   : > { %852 = vst.msk [vmem:[#allocation3 + $0x118] sm:$0xf0] %vm386_vm7, %v846_v8 }
 0x18c   : > { %v624_v28 = vpop.permute.xlu1 %623  ;;  %v792_v29 = vpop.permute.xlu0 %791  ;;  %v904_v6 = vld [vmem:[#allocation3 + $0xd0] sm:$0xff] }
 0x18d   : > { %v627_v31 = vsel %vm625_vm1, %v1911_v23, %v624_v28  ;;  %633 = vst.msk [vmem:[#allocation3 + $0xa0] sm:$0xf0] %vm386_vm7, %v624_v28  ;;  %v797_v16 = vsel %vm795_vm13, %v1875_v1, %v792_v29  ;;  %v798_v60 = vsel %vm795_vm13, %v792_v29, %v1946_v46  ;;  %v911_v1 = vld [vmem:[#allocation3 + $0x108] sm:$0xff]  ;;  %vm440_vm13 = vcmask 1014784  }
 0x18e   : > { %632 = vst [vmem:[#allocation3 + $0x98] sm:$0xf0] %v627_v31  ;;  %803 = vst [vmem:[#allocation3 + $0xf8] sm:$0xf0] %v797_v16  ;;  %v903_v46 = vld [vmem:[#allocation3 + $0xc8] sm:$0xff]  ;;  %vm420_vm1 = vcmask 1022976  }
 0x18f   : > { %804 = vst.msk [vmem:[#allocation3 + $0x100] sm:$0xf0] %vm386_vm7, %v798_v60 }
 0x190   : > { %v583_v32 = vpop.permute.xlu1 %582  ;;  %v818_v33 = vpop.permute.xlu0 %817  ;;  %v901_v10 = vld [vmem:[#allocation3 + $0xb8] sm:$0xff] }
 0x191   : > { %v586_v34 = vsel %vm584_vm3, %v1922_v30, %v583_v32  ;;  %592 = vst.msk [vmem:[#allocation3 + $0x88] sm:$0xf0] %vm386_vm7, %v583_v32  ;;  %v822_v23 = vsel %vm819_vm11, %v816_v18, %v818_v33  ;;  %v912_v36 = vld [vmem:[#allocation3 + $0x110] sm:$0xff]  ;;  %vm481_vm11 = vcmask 875520   ;;  %vm917_vm3 = vcmask 818176  }
 0x192   : > { %591 = vst [vmem:[#allocation3 + $0x80] sm:$0xf0] %v586_v34  ;;  %828 = vst.msk [vmem:[#allocation3 + $0x118] sm:$0xf] %vm364_vm10, %v822_v23  ;;  %939 = vmatprep.subr.mxu0 %v912_v36  ;;  %v900_v49 = vld [vmem:[#allocation3 + $0xb0] sm:$0xff] }
 0x193   : > { %940 = vmatpush1.msra.mxu0 %v911_v1 }
 0x194   : > { %v542_v37 = vpop.permute.xlu1 %541  ;;  %v770_v38 = vpop.permute.xlu0 %769  ;;  %v898_v15 = vld [vmem:[#allocation3 + $0xa0] sm:$0xff] }
 0x195   : > { %v545_v39 = vsel %vm543_vm4, %v1930_v35, %v542_v37  ;;  %551 = vst.msk [vmem:[#allocation3 + $0x70] sm:$0xf0] %vm386_vm7, %v542_v37  ;;  %v774_v30 = vsel %vm771_vm12, %v768_v22, %v770_v38  ;;  %v909_v40 = vld [vmem:[#allocation3 + $0xf8] sm:$0xff]  ;;  %vm502_vm12 = vcmask 867328  }
 0x196   : > { %550 = vst [vmem:[#allocation3 + $0x68] sm:$0xf0] %v545_v39  ;;  %780 = vst.msk [vmem:[#allocation3 + $0x100] sm:$0xf] %vm364_vm10, %v774_v30  ;;  %941 = vmatprep.subr.mxu0 %v909_v40  ;;  %v897_v55 = vld [vmem:[#allocation3 + $0x98] sm:$0xff] }
 0x197   : > { %942 = vmatpush1.msra.mxu0 %v908_v41 }
 0x198   : > { %v480_v43 = vpop.permute.xlu1 %479  ;;  %943 = vmatprep.subr.mxu0 %v906_v42  ;;  %v478_v44 = vpop.permute.xlu0 %477  ;;  %v895_v17 = vld [vmem:[#allocation3 + $0x88] sm:$0xff] }
 0x199   : > { %489 = vst.msk [vmem:[#allocation3 + $0x58] sm:$0xf] %vm364_vm10, %v480_v43  ;;  %v483_v35 = vsel %vm481_vm11, %v478_v44, %v480_v43  ;;  %944 = vmatpush1.msra.mxu0 %v905_v45  ;;  %v913_v47 = vld [vmem:[#allocation3 + $0x118] sm:$0xff]  ;;  %v894_v58 = vld [vmem:[#allocation3 + $0x80] sm:$0xff]  ;;  %v877_v43 = vld [vmem:[#allocation6] sm:$0xff] }
 0x19a   : > { %488 = vst [vmem:[#allocation3 + $0x50] sm:$0xf] %v483_v35  ;;  %945 = vmatprep.subr.mxu0 %v903_v46  ;;  %1421 = vmatpush3.msra.mxu1 %v913_v47  ;;  %v1080_v46 = vlaneseq }
 0x19b   : > { %946 = vmatpush1.msra.mxu0 %v902_v48  ;;  %1422 = vmatprep.subr.mxu1 %v1650_v50  ;;  %v1078_v48 = vld [vmem:[%s2070_s2] sm:$0x7] }
 0x19c   : > { %v501_v51 = vpop.permute.xlu1 %500  ;;  %947 = vmatprep.subr.mxu0 %v900_v49  ;;  %v499_v52 = vpop.permute.xlu0 %498  ;;  %v892_v22 = vld [vmem:[#allocation3 + $0x70] sm:$0xff]  ;;  %v1081_v47 = vshrl.u32 %v1080_v46, 7 }
 0x19d   : > { %510 = vst.msk [vmem:[#allocation3 + $0x58] sm:$0xf0] %vm386_vm7, %v501_v51  ;;  %v504_v54 = vsel %vm502_vm12, %v499_v52, %v501_v51  ;;  %948 = vmatpush1.msra.mxu0 %v899_v53  ;;  %v910_v56 = vld [vmem:[#allocation3 + $0x100] sm:$0xff]  ;;  %v891_v5 = vld [vmem:[#allocation3 + $0x68] sm:$0xff] }
 0x19e   : > { %509 = vst [vmem:[#allocation3 + $0x50] sm:$0xf0] %v504_v54  ;;  %949 = vmatprep.subr.mxu0 %v897_v55  ;;  %1423 = vmatpush3.msra.mxu1 %v910_v56  ;;  %v1082_v49 = vsub.s32 0, %v1081_v47 }
 0x19f   : > { %950 = vmatpush1.msra.mxu0 %v896_v57  ;;  %1424 = vmatprep.subr.mxu1 %v1650_v50 }
 0x1a0   : > { %v497_v61 = vpop.permute.xlu1 %496  ;;  %951 = vmatprep.subr.mxu0 %v894_v58  ;;  %1425 = vmatpush3.msra.mxu1 %v907_v59  ;;  %v476_v62 = vpop.permute.xlu0 %475  ;;  %v1083_v54 = vrot.slane %v1078_v48, %v1082_v49 }
 0x1a1   : > { %v503_v0 = vsel %vm502_vm12, %v497_v61, %v499_v52  ;;  %v482_v3 = vsel %vm481_vm11, %v476_v62, %v478_v44  ;;  %952 = vmatpush1.msra.mxu0 %v893_v63  ;;  %1426 = vmatprep.subr.mxu1 %v1650_v50  ;;  %v1086_v52 = vsub.s32 1, %v1081_v47 }
 0x1a2   : > { %508 = vst [vmem:[#allocation3 + $0x48] sm:$0xf0] %v503_v0  ;;  %487 = vst [vmem:[#allocation3 + $0x48] sm:$0xf] %v482_v3  ;;  %953 = vmatprep.subr.mxu0 %v891_v5  ;;  %1427 = vmatpush3.msra.mxu1 %v904_v6 }
 0x1a3   : > { %954 = vmatpush1.msra.mxu0 %v890_v7  ;;  %1428 = vmatprep.subr.mxu1 %v1650_v50  ;;  %v1087_v56 = vrot.slane %v1078_v48, %v1086_v52 }
 0x1a4   : > { %v439_v11 = vpop.permute.xlu1 %438  ;;  %1429 = vmatpush3.msra.mxu1 %v901_v10  ;;  %v437_v12 = vpop.permute.xlu0 %436  ;;  %v889_v24 = vld [vmem:[#allocation3 + $0x58] sm:$0xff] }
 0x1a5   : > { %448 = vst.msk [vmem:[#allocation3 + $0x40] sm:$0xf] %vm364_vm10, %v439_v11  ;;  %v442_v13 = vsel %vm440_vm13, %v437_v12, %v439_v11  ;;  %1430 = vmatprep.subr.mxu1 %v1650_v50  ;;  %v888_v14 = vld [vmem:[#allocation3 + $0x50] sm:$0xff] }
 0x1a6   : > { %447 = vst [vmem:[#allocation3 + $0x38] sm:$0xf] %v442_v13  ;;  %955 = vmatprep.subr.mxu0 %v888_v14  ;;  %1431 = vmatpush3.msra.mxu1 %v898_v15  ;;  %v1098_v13 = vld [vmem:[#allocation5] sm:$0xff] }
 0x1a7   : > { %1432 = vmatprep.subr.mxu1 %v1650_v50 }
 0x1a8   : > { %v460_v18 = vpop.permute.xlu1 %459  ;;  %1433 = vmatpush3.msra.mxu1 %v895_v17  ;;  %v458_v19 = vpop.permute.xlu0 %457 }
 0x1a9   : > { %469 = vst.msk [vmem:[#allocation3 + $0x40] sm:$0xf0] %vm386_vm7, %v460_v18  ;;  %v463_v20 = vsel %vm461_vm15, %v458_v19, %v460_v18  ;;  %1434 = vmatprep.subr.mxu1 %v1650_v50  ;;  %v887_v21 = vld [vmem:[#allocation3 + $0x48] sm:$0xff] }
 0x1aa   : > { %468 = vst [vmem:[#allocation3 + $0x38] sm:$0xf0] %v463_v20  ;;  %956 = vmatpush1.msra.mxu0 %v887_v21  ;;  %1435 = vmatpush3.msra.mxu1 %v892_v22 }
 0x1ab   : > { %1436 = vmatprep.subr.mxu1 %v1650_v50 }
 0x1ac   : > { %v456_v25 = vpop.permute.xlu1 %455  ;;  %1437 = vmatpush3.msra.mxu1 %v889_v24  ;;  %v435_v26 = vpop.permute.xlu0 %434 }
 0x1ad   : > { %v462_v2 = vsel %vm461_vm15, %v456_v25, %v458_v19  ;;  %v441_v4 = vsel %vm440_vm13, %v435_v26, %v437_v12  ;;  %1438 = vmatprep.subr.mxu1 %v1650_v50 }
 0x1ae   : > { %467 = vst [vmem:[#allocation3 + $0x30] sm:$0xf0] %v462_v2  ;;  %446 = vst [vmem:[#allocation3 + $0x30] sm:$0xf] %v441_v4 }
 0x1b0   : > { %v398_v27 = vpop.permute.xlu1 %397  ;;  %v396_v9 = vpop.permute.xlu0 %395  ;;  %v886_v8 = vld [vmem:[#allocation3 + $0x40] sm:$0xff] }
 0x1b1   : > { %407 = vst.msk [vmem:[#allocation3 + $0x28] sm:$0xf] %vm364_vm10, %v398_v27  ;;  %v401_v28 = vsel %vm399_vm0, %v396_v9, %v398_v27  ;;  %1439 = vmatpush3.msra.mxu1 %v886_v8  ;;  %v885_v29 = vld [vmem:[#allocation3 + $0x38] sm:$0xff]  ;;  %vm378_vm10 = vcmask 1039360  }
 0x1b2   : > { %406 = vst [vmem:[#allocation3 + $0x20] sm:$0xf] %v401_v28  ;;  %957 = vmatprep.subr.mxu0 %v885_v29  ;;  %1440 = vmatprep.subr.mxu1 %v1650_v50 }
 0x1b4   : > { %v419_v31 = vpop.permute.xlu1 %418  ;;  %v417_v16 = vpop.permute.xlu0 %416 }
 0x1b5   : > { %428 = vst.msk [vmem:[#allocation3 + $0x28] sm:$0xf0] %vm386_vm7, %v419_v31  ;;  %v422_v60 = vsel %vm420_vm1, %v417_v16, %v419_v31  ;;  %v884_v32 = vld [vmem:[#allocation3 + $0x30] sm:$0xff] }
 0x1b6   : > { %427 = vst [vmem:[#allocation3 + $0x20] sm:$0xf0] %v422_v60  ;;  %958 = vmatpush1.msra.mxu0 %v884_v32 }
 0x1b8   : > { %v415_v33 = vpop.permute.xlu1 %414  ;;  %v394_v34 = vpop.permute.xlu0 %393 }
 0x1b9   : > { %v421_v23 = vsel %vm420_vm1, %v415_v33, %v417_v16  ;;  %v400_v36 = vsel %vm399_vm0, %v394_v34, %v396_v9 }
 0x1ba   : > { %426 = vst [vmem:[#allocation3 + $0x18] sm:$0xf0] %v421_v23  ;;  %405 = vst [vmem:[#allocation3 + $0x18] sm:$0xf] %v400_v36 }
 0x1bc   : > { %v377_v1 = vpop.permute.xlu1 %376  ;;  %v375_v37 = vpop.permute.xlu0 %374  ;;  %v883_v38 = vld [vmem:[#allocation3 + $0x28] sm:$0xff] }
 0x1bd   : > { %387 = vst.msk [vmem:[#allocation3 + $0x10] sm:$0xf0] %vm386_vm7, %v377_v1  ;;  %v380_v39 = vsel %vm378_vm10, %v375_v37, %v377_v1  ;;  %1441 = vmatpush3.msra.mxu1 %v883_v38  ;;  %v882_v30 = vld [vmem:[#allocation3 + $0x20] sm:$0xff] }
 0x1be   : > { %385 = vst [vmem:[#allocation3 + $0x8] sm:$0xf0] %v380_v39  ;;  %959 = vmatprep.subr.mxu0 %v882_v30  ;;  %1442 = vmatprep.subr.mxu1 %v1650_v50  ;;  %v1090_v50 = vsub.s32 2, %v1081_v47 }
 0x1c0   : > { %v373_v40 = vpop.permute.xlu0 %372  ;;  %v1091_v53 = vrot.slane %v1078_v48, %v1090_v50 }
 0x1c1   : > { %v379_v41 = vsel %vm378_vm10, %v373_v40, %v375_v37  ;;  %v881_v42 = vld [vmem:[#allocation3 + $0x18] sm:$0xff] }
 0x1c2   : > { %384 = vst [vmem:[#allocation3] sm:$0xf0] %v379_v41  ;;  %960 = vmatpush1.msra.mxu0 %v881_v42 }
 0x1c4   : > { %v880_v44 = vld [vmem:[#allocation3 + $0x10] sm:$0xff] }
 0x1c5   : > { %1443 = vmatpush3.msra.mxu1 %v880_v44  ;;  %v879_v45 = vld [vmem:[#allocation3 + $0x8] sm:$0xff] }
 0x1c6   : > { %961 = vmatprep.subr.mxu0 %v879_v45  ;;  %1445 = vmatmul.mubr.msk.f32.vlgmr.msra.gmra.mxu1 %vm917_vm3, %v877_v43 }
 0x1c9   : > { %v878_v35 = vld [vmem:[#allocation3] sm:$0xff] }
 0x1ca   : > { %962 = vmatpush1.msra.mxu0 %v878_v35 }
 0x1cb   : > { %1393 = vmatmul.mubr.msk.f32.vlgmr.msra.gmra.mxu0 %vm917_vm3, %v877_v43 }
 0x286   : > { %v1068_v51 = vpop.f32.mrf.mxu1 }
 0x287   : > { %1077 = vst.msk [vmem:[%s1074_s25 + $0x10] sm:$0xff] %vm748_vm14, %v1068_v51  ;;  %v1097_v58 = vmul.f32 %v1091_v53, %v1068_v51 }
 0x288   : > { %v1446_v55 = vpop.f32.mrf.mxu1 }
 0x289   : > { %v1110_v63 = vmul.f32 %v1097_v58, %v1068_v51  ;;  %v1100_v0 = vsel %vm748_vm14, %v1097_v58, 0.0 }
 0x28b   : > { %v997_v57 = vpop.f32.mrf.mxu0  ;;  %v1112_v11 = vsel %vm748_vm14, %v1110_v63, 0.0 }
 0x28c   : > { %1075 = vst [vmem:[%s1074_s25] sm:$0xff] %v997_v57  ;;  %v1095_v59 = vmul.f32 %v1083_v54, %v997_v57 }
 0x28d   : > { %v999_v61 = vpop.f32.mrf.mxu0 }
 0x28e   : > { %1076 = vst [vmem:[%s1074_s25 + $0x8] sm:$0xff] %v999_v61  ;;  %v1096_v62 = vmul.f32 %v1087_v56, %v999_v61  ;;  %v1108_v3 = vmul.f32 %v1095_v59, %v997_v57 }
 0x290   : > { %v1109_v5 = vmul.f32 %v1096_v62, %v999_v61  ;;  %v1099_v6 = vadd.f32 %v1096_v62, %v1095_v59 }
 0x292   : > { %v1101_v7 = vadd.f32 %v1100_v0, %v1099_v6  ;;  %v1111_v10 = vadd.f32 %v1109_v5, %v1108_v3 }
 0x294   : > { %1102 = vadd.xlane.f32.xlu1 %v1101_v7  ;;  %v1113_v12 = vadd.f32 %v1112_v11, %v1111_v10 }
 0x296   : > { %1114 = vadd.xlane.f32.xlu0 %v1113_v12 }
 0x31d   : > { %v1103_v14 = vpop.xlane.xlu1 %1102 }
 0x31e   : > { %v1104_v15 = vadd.f32 %v1103_v14, %v1098_v13 }
 0x31f   : > { %v1115_v17 = vpop.xlane.xlu0 %1114 }
 0x320   : > { %1106 = vst.msk [vmem:[#allocation5] sm:$0xff] %vm1105_vm5, %v1104_v15 }
 0x326   : > { %1122 = sbr.rel (%p1397_p2) target bundleno = 1380 (0x564), region = 52 }
 0x327   : > { %v1107_v18 = vld [vmem:[#allocation5] sm:$0xff] }
 0x328   : > { %v1116_v19 = vadd.f32 %v1115_v17, %v1107_v18 }
 0x32a   : > { %1118 = vst.msk [vmem:[#allocation5] sm:$0xff] %vm1117_vm6, %v1116_v19 }
 0x32b   : > { %v1660_v2 = vmov 0   ;;  %v1131_v27 = vld [vmem:[%s2071_s3] sm:$0xff]  ;;  %v1142_v16 = vld [vmem:[#allocation4] sm:$0xff]  ;;  %v1143_v60 = vld [vmem:[#allocation4 + $0x8] sm:$0xff]  ;;  %vm1164_vm14 = vcmask 130048   ;;  %vm1170_vm8 = vcmask 261248  }
 0x32c   : > { %1548 = vset.pattern.permute.xlu1 %v1660_v2  ;;  %1549 = vset.pattern.permute.xlu0 %v1660_v2  ;;  %v1139_v28 = vld [vmem:[%s2072_s4] sm:$0xff]  ;;  %v1241_v33 = vld [vmem:[#allocation4 + $0x20] sm:$0xff]  ;;  %v1144_v35 = vld [vmem:[#allocation4 + $0x10] sm:$0xff]  ;;  %vm1175_vm9 = vcmask 392448   ;;  %vm1180_vm2 = vcmask 523648   ;;  %vm1185_vm7 = vcmask 654848  }
 0x32d   : > { %v1240_v32 = vld [vmem:[#allocation4 + $0x18] sm:$0xff]  ;;  %v1242_v50 = vld [vmem:[#allocation4 + $0x28] sm:$0xff]  ;;  %vm1190_vm11 = vcmask 786048   ;;  %vm1199_vm12 = vcmask 917248   ;;  %vm1204_vm13 = vcmask 1048448  }
 0x331   : > { %v1123_v20 = vld [vmem:[#allocation5] sm:$0xff] }
 0x332   : > { %v1124_v21 = vmul.f32 0.001953125, %v1123_v20 }
 0x334   : > { %v1125_v22 = vmul.f32 %v1124_v21, %v1124_v21 }
 0x336   : > { %1127 = vrot.lane.b32.xlu0 %v1125_v22, %s1659_s26 }
 0x3a8   : > { %v1128_v24 = vpop.permute.xlu0 %1127 }
 0x3a9   : > { %v1130_v25 = vsub.f32 %v1124_v21, %v1128_v24 }
 0x3ab   : > { %v1132_v26 = vadd.f32 1e-05, %v1130_v25 }
 0x3ad   : > { %1550 = vrsqrt.f32 %v1132_v26 }
 0x3ba   : > { %v1551_v4 = vpop.eup %1550 }
 0x3bb   : > { %1135 = vrot.lane.b32.xlu0 %v1551_v4, %s1661_s27 }
 0x42d   : > { %v1136_v9 = vpop.permute.xlu0 %1135 }
 0x42e   : > { %v1138_v8 = vmul.f32 %v1136_v9, %v1131_v27 }
 0x430   : > { %v1140_v29 = vmul.f32 %v1138_v8, %v1124_v21  ;;  %1147 = vperm.xlu1 %1548, %v1138_v8  }
 0x432   : > { %v1141_v31 = vsub.f32 %v1139_v28, %v1140_v29 }
 0x434   : > { %1155 = vperm.xlu1 %1548, %v1141_v31  }
 0x4ab   : > { %v1148_v34 = vpop.permute.xlu1 %1147 }
 0x4ac   : > { %v1150_v23 = vmul.f32 %v1148_v34, %v1142_v16  ;;  %v1151_v36 = vmul.f32 %v1148_v34, %v1143_v60  ;;  %v1243_v1 = vmul.f32 %v1240_v32, %v1148_v34  ;;  %v1244_v37 = vmul.f32 %v1241_v33, %v1148_v34 }
 0x4ad   : > { %v1152_v46 = vmul.f32 %v1148_v34, %v1144_v35  ;;  %v1245_v49 = vmul.f32 %v1242_v50, %v1148_v34 }
 0x4af   : > { %v1156_v38 = vpop.permute.xlu1 %1155 }
 0x4b0   : > { %v1158_v39 = vadd.f32 %v1156_v38, %v1150_v23  ;;  %v1159_v30 = vadd.f32 %v1156_v38, %v1151_v36  ;;  %v1246_v40 = vadd.f32 %v1243_v1, %v1156_v38  ;;  %v1247_v41 = vadd.f32 %v1244_v37, %v1156_v38 }
 0x4b1   : > { %v1160_v47 = vadd.f32 %v1156_v38, %v1152_v46  ;;  %v1248_v51 = vadd.f32 %v1245_v49, %v1156_v38 }
 0x4b2   : > { %v1161_v42 = vmax.f32 %v1158_v39, 0.0  ;;  %v1162_v43 = vmax.f32 %v1159_v30, 0.0  ;;  %v1249_v44 = vmax.f32 %v1246_v40, 0.0  ;;  %v1250_v45 = vmax.f32 %v1247_v41, 0.0 }
 0x4b3   : > { %v1163_v48 = vmax.f32 %v1160_v47, 0.0  ;;  %v1251_v52 = vmax.f32 %v1248_v51, 0.0 }
 0x4b4   : > { %1206 = vrot.lane.b32.xlu0 %v1162_v43, %s1662_s7  ;;  %1287 = vrot.lane.b32.xlu1 %v1250_v45, %s1662_s7  ;;  %1165 = vst.msk [vmem:[#allocation9] sm:$0xff] %vm1164_vm14, %v1161_v42  ;;  %1253 = vst.msk [vmem:[#allocation9 + $0x10] sm:$0xff] %vm1164_vm14, %v1249_v44 }
 0x4b8   : > { %1167 = vrot.lane.b32.xlu0 %v1161_v42, %s1663_s9  ;;  %1210 = vrot.lane.b32.xlu1 %v1162_v43, %s1664_s10 }
 0x4bc   : > { %1291 = vrot.lane.b32.xlu1 %v1250_v45, %s1664_s10  ;;  %1255 = vrot.lane.b32.xlu0 %v1249_v44, %s1663_s9 }
 0x4c0   : > { %1214 = vrot.lane.b32.xlu1 %v1162_v43, %s1665_s11  ;;  %1172 = vrot.lane.b32.xlu0 %v1161_v42, %s1666_s13 }
 0x4c4   : > { %1295 = vrot.lane.b32.xlu1 %v1250_v45, %s1665_s11  ;;  %1259 = vrot.lane.b32.xlu0 %v1249_v44, %s1666_s13 }
 0x4c8   : > { %1218 = vrot.lane.b32.xlu1 %v1162_v43, %s1667_s14  ;;  %1177 = vrot.lane.b32.xlu0 %v1161_v42, %s1668_s12 }
 0x4cc   : > { %1299 = vrot.lane.b32.xlu1 %v1250_v45, %s1667_s14  ;;  %1263 = vrot.lane.b32.xlu0 %v1249_v44, %s1668_s12 }
 0x4d0   : > { %1222 = vrot.lane.b32.xlu1 %v1162_v43, %s1669_s15  ;;  %1182 = vrot.lane.b32.xlu0 %v1161_v42, %s1670_s8 }
 0x4d4   : > { %1303 = vrot.lane.b32.xlu1 %v1250_v45, %s1669_s15  ;;  %1267 = vrot.lane.b32.xlu0 %v1249_v44, %s1670_s8 }
 0x4d8   : > { %1193 = vrot.lane.b32.xlu1 %v1161_v42, %s1671_s16  ;;  %1187 = vrot.lane.b32.xlu0 %v1161_v42, %s1672_s17 }
 0x4dc   : > { %1227 = vrot.lane.b32.xlu1 %v1163_v48, %s1673_s20  ;;  %1195 = vrot.lane.b32.xlu0 %v1162_v43, %s1671_s16 }
 0x4e0   : > { %1276 = vrot.lane.b32.xlu1 %v1249_v44, %s1671_s16  ;;  %1271 = vrot.lane.b32.xlu0 %v1249_v44, %s1672_s17 }
 0x4e4   : > { %1308 = vrot.lane.b32.xlu1 %v1251_v52, %s1673_s20  ;;  %1278 = vrot.lane.b32.xlu0 %v1250_v45, %s1671_s16 }
 0x4e8   : > { %1312 = vrot.lane.b32.xlu1 %v1251_v52, %s1674_s21  ;;  %1231 = vrot.lane.b32.xlu0 %v1163_v48, %s1674_s21 }
 0x4ec   : > { %1235 = vrot.lane.b32.xlu1 %v1163_v48, %s1675_s22  ;;  %1201 = vrot.lane.b32.xlu0 %v1162_v43, %s1676_s23 }
 0x4f0   : > { %1316 = vrot.lane.b32.xlu1 %v1251_v52, %s1675_s22  ;;  %1283 = vrot.lane.b32.xlu0 %v1250_v45, %s1676_s23 }
 0x526   : > { %v1207_v53 = vpop.permute.xlu0 %1206  ;;  %v1288_v54 = vpop.permute.xlu1 %1287 }
 0x527   : > { %1209 = vst.msk [vmem:[#allocation9 + $0x8] sm:$0xff] %vm1164_vm14, %v1207_v53  ;;  %1290 = vst.msk [vmem:[#allocation9 + $0x18] sm:$0xff] %vm1164_vm14, %v1288_v54 }
 0x52a   : > { %v1168_v55 = vpop.permute.xlu0 %1167  ;;  %v1211_v56 = vpop.permute.xlu1 %1210 }
 0x52b   : > { %1171 = vst.msk [vmem:[#allocation9] sm:$0xff] %vm1170_vm8, %v1168_v55  ;;  %1213 = vst.msk [vmem:[#allocation9 + $0x8] sm:$0xff] %vm1170_vm8, %v1211_v56 }
 0x52e   : > { %v1292_v57 = vpop.permute.xlu1 %1291  ;;  %v1256_v58 = vpop.permute.xlu0 %1255 }
 0x52f   : > { %1294 = vst.msk [vmem:[#allocation9 + $0x18] sm:$0xff] %vm1170_vm8, %v1292_v57  ;;  %1258 = vst.msk [vmem:[#allocation9 + $0x10] sm:$0xff] %vm1170_vm8, %v1256_v58 }
 0x532   : > { %v1215_v59 = vpop.permute.xlu1 %1214  ;;  %v1173_v61 = vpop.permute.xlu0 %1172 }
 0x533   : > { %1217 = vst.msk [vmem:[#allocation9 + $0x8] sm:$0xff] %vm1175_vm9, %v1215_v59  ;;  %1176 = vst.msk [vmem:[#allocation9] sm:$0xff] %vm1175_vm9, %v1173_v61 }
 0x536   : > { %v1296_v62 = vpop.permute.xlu1 %1295  ;;  %v1260_v63 = vpop.permute.xlu0 %1259 }
 0x537   : > { %1298 = vst.msk [vmem:[#allocation9 + $0x18] sm:$0xff] %vm1175_vm9, %v1296_v62  ;;  %1262 = vst.msk [vmem:[#allocation9 + $0x10] sm:$0xff] %vm1175_vm9, %v1260_v63 }
 0x53a   : > { %v1219_v0 = vpop.permute.xlu1 %1218  ;;  %v1178_v3 = vpop.permute.xlu0 %1177 }
 0x53b   : > { %1221 = vst.msk [vmem:[#allocation9 + $0x8] sm:$0xff] %vm1180_vm2, %v1219_v0  ;;  %1181 = vst.msk [vmem:[#allocation9] sm:$0xff] %vm1180_vm2, %v1178_v3 }
 0x53e   : > { %v1300_v5 = vpop.permute.xlu1 %1299  ;;  %v1264_v6 = vpop.permute.xlu0 %1263 }
 0x53f   : > { %1302 = vst.msk [vmem:[#allocation9 + $0x18] sm:$0xff] %vm1180_vm2, %v1300_v5  ;;  %1266 = vst.msk [vmem:[#allocation9 + $0x10] sm:$0xff] %vm1180_vm2, %v1264_v6 }
 0x542   : > { %v1223_v7 = vpop.permute.xlu1 %1222  ;;  %v1183_v10 = vpop.permute.xlu0 %1182 }
 0x543   : > { %1225 = vst.msk [vmem:[#allocation9 + $0x8] sm:$0xff] %vm1185_vm7, %v1223_v7  ;;  %1186 = vst.msk [vmem:[#allocation9] sm:$0xff] %vm1185_vm7, %v1183_v10 }
 0x546   : > { %v1304_v11 = vpop.permute.xlu1 %1303  ;;  %v1268_v12 = vpop.permute.xlu0 %1267 }
 0x547   : > { %1306 = vst.msk [vmem:[#allocation9 + $0x18] sm:$0xff] %vm1185_vm7, %v1304_v11  ;;  %1270 = vst.msk [vmem:[#allocation9 + $0x10] sm:$0xff] %vm1185_vm7, %v1268_v12 }
 0x54a   : > { %v1194_v13 = vpop.permute.xlu1 %1193  ;;  %v1188_v14 = vpop.permute.xlu0 %1187 }
 0x54b   : > { %1191 = vst.msk [vmem:[#allocation9] sm:$0xff] %vm1190_vm11, %v1188_v14 }
 0x54e   : > { %v1228_v15 = vpop.permute.xlu1 %1227  ;;  %v1196_v17 = vpop.permute.xlu0 %1195 }
 0x54f   : > { %1230 = vst.msk [vmem:[#allocation9 + $0x8] sm:$0xff] %vm1190_vm11, %v1228_v15  ;;  %v1197_v18 = vsel %vm543_vm4, %v1194_v13, %v1196_v17 }
 0x550   : > { %1200 = vst.msk [vmem:[#allocation9] sm:$0xff] %vm1199_vm12, %v1197_v18 }
 0x552   : > { %v1277_v19 = vpop.permute.xlu1 %1276  ;;  %v1272_v20 = vpop.permute.xlu0 %1271 }
 0x553   : > { %1274 = vst.msk [vmem:[#allocation9 + $0x10] sm:$0xff] %vm1190_vm11, %v1272_v20 }
 0x556   : > { %v1309_v21 = vpop.permute.xlu1 %1308  ;;  %v1279_v22 = vpop.permute.xlu0 %1278 }
 0x557   : > { %1311 = vst.msk [vmem:[#allocation9 + $0x18] sm:$0xff] %vm1190_vm11, %v1309_v21  ;;  %v1280_v24 = vsel %vm543_vm4, %v1277_v19, %v1279_v22 }
 0x558   : > { %1282 = vst.msk [vmem:[#allocation9 + $0x10] sm:$0xff] %vm1199_vm12, %v1280_v24 }
 0x55a   : > { %v1313_v25 = vpop.permute.xlu1 %1312  ;;  %v1232_v26 = vpop.permute.xlu0 %1231 }
 0x55b   : > { %1315 = vst.msk [vmem:[#allocation9 + $0x18] sm:$0xff] %vm1199_vm12, %v1313_v25  ;;  %1234 = vst.msk [vmem:[#allocation9 + $0x8] sm:$0xff] %vm1199_vm12, %v1232_v26 }
 0x55e   : > { %v1236_v2 = vpop.permute.xlu1 %1235  ;;  %v1202_v4 = vpop.permute.xlu0 %1201 }
 0x55f   : > { %1238 = vst.msk [vmem:[#allocation9 + $0x8] sm:$0xff] %vm1204_vm13, %v1236_v2  ;;  %1205 = vst.msk [vmem:[#allocation9] sm:$0xff] %vm1204_vm13, %v1202_v4 }
 0x562   : > { %v1317_v27 = vpop.permute.xlu1 %1316  ;;  %v1284_v9 = vpop.permute.xlu0 %1283 }
 0x563   : > { %1319 = vst.msk [vmem:[#allocation9 + $0x18] sm:$0xff] %vm1204_vm13, %v1317_v27  ;;  %1286 = vst.msk [vmem:[#allocation9 + $0x10] sm:$0xff] %vm1204_vm13, %v1284_v9 }
 0x564 PF: > { %p1461_p3 = scmp.eq.s32.totalorder %s1716_s19, 1  ;;  %s1677_s24 = smov [#allocation9]  }
 0x565   : > { %s1326_s25 = sshll.u32 %s1677_s24, 4  ;;  %s1327_s25 = int_to_ptr.vmem [resolvable:$true] %s1326_s25 }
 0x566   : > { %s1578_s26 = scalar_lea.vmem %s1327_s25, 512  ;;  %p1585_p7 = scmp.lt.s32.totalorder %s1327_s25, %s1327_s25 }
 0x567   : > { %p1579_p4 = scmp.ne.s32.totalorder %s1327_s25, %s1578_s26  ;;  %p1586_p8 = scmp.lt.s32.totalorder %s1578_s26, %s1578_s26 }
 0x569   : > { %p1580_p5 = pnand %p1579_p4, %p1461_p3  ;;  %p1587_p9 = por %p1586_p8, %p1585_p7 }
 0x56b   : > { %p1581_p6 = pneg %p1580_p5 }
 0x56d   : > { %p1588_p10 = pnand %p1587_p9, %p1581_p6 }
 0x56f   : > { %1591 = shalt.err (!%p1588_p10)
}
 0x570   : > { %s1678_s27 = smov 256   ;;  %s1679_s28 = smov 16  }
 0x571   : > { %1452 = dma.vmem_to_hbm [thread:$0]  (%p1461_p3), %s1327_s25, 512, %s2073_s5, [#allocation8], %s1678_s27, %s1678_s27, %s1679_s28  }
 0x572   : > { %1611 = dma.done.wait (%p1461_p3), [#allocation8], 512  }
 0x573   : > { %1613 = vsyncadd (%p1461_p3), [#allocation8], 4294966784 }
 0x574 PF: > { %s17_s18 = sadd.s32 1, %s1616_s18  }
 0x575   : > { %p14_p11 = scmp.ge.s32.totalorder %s17_s18, 4  }
 0x577   :  { %16 = sbr.rel (!%p14_p11) target bundleno = 2 (0x2), region = 83 }
 0x57c   :  { %1342 = vsyncpa [#allocation7], 1 }
 0x57d   :  { %1344 = vsyncpa [#allocation7 + $0x1], 1 }
 0x57e   :  { %1345 = vsyncpa [#allocation8], 1 }
 0x57f   :  { %1347 = vsyncpa [#allocation8 + $0x1], 1 }

</bundles_post_ra>
